<compile_context>
chip_gen: v7x
topology: tpu7x:2x2x1
jax: 0.10.0
libtpu: 0.0.40
codegen_flags: <defaults>
</compile_context>

<pallas_src>
import math

import numpy as np
import jax
import jax.numpy as jnp
from jax.experimental import pallas as pl
from jax.experimental.pallas import tpu as pltpu

WINDOW_SIZE = 11
SIGMA = 1.5

SOBEL_X = ((-1.0, 0.0, 1.0), (-2.0, 0.0, 2.0), (-1.0, 0.0, 1.0))
SOBEL_Y = ((1.0, 2.0, 1.0), (0.0, 0.0, 0.0), (-1.0, -2.0, -1.0))


def _gaussian_1d(ws, sigma):
    g = [math.exp(-((x - ws // 2) ** 2) / float(2 * sigma ** 2)) for x in range(ws)]
    s = sum(g)
    return [v / s for v in g]


def _band(n_out, n_in, taps, offset):
    """Banded matrix M with M[i, i + k + offset] = taps[k] (OOB entries dropped)."""
    m = np.zeros((n_out, n_in), np.float32)
    taps = np.asarray(taps, np.float32)
    for k in range(taps.shape[0]):
        for i in range(n_out):
            j = i + k + offset
            if 0 <= j < n_in:
                m[i, j] = taps[k]
    return m


def _fusion_loss_kernel(c_ref, gt_ref, f_ref, gv_ref, gh_ref,
                        sh_ref, dh_ref, sw_ref, dw_ref, o_ref):
    """One grid step == one (batch element, GT index) pair.

    c_ref  : SMEM (10,)          [C1_0, C2_0, C1_1, C2_1, ...] per GT
    gt_ref : VMEM (1, 1, H, W)   GT_i image
    f_ref  : VMEM (1, H, W)      fused image
    gv/gh  : VMEM banded Gaussian matrices (Ho, H) / (W, Wo)   (VALID conv)
    sh/dh  : VMEM banded Sobel row matrices (H, H)             (zero-pad conv)
    sw/dw  : VMEM banded Sobel col matrices (W, W)
    o_ref  : VMEM (1, 1, 1, 128) lanes [0]=grad_sum, [1]=ssim_sum, [2]=l1_sum
    """
    i = pl.program_id(1)
    c1 = c_ref[2 * i]
    c2 = c_ref[2 * i + 1]

    x = gt_ref[0, 0]          # (H, W)
    f = f_ref[0]              # (H, W)

    hp = jax.lax.Precision.HIGHEST

    def mm(a, b):
        return jnp.dot(a, b, precision=hp, preferred_element_type=jnp.float32)

    # ---- Sobel |Gx| + |Gy| (zero padding baked into the banded matrices) — MXU
    sx = mm(mm(sh_ref[...], x), dw_ref[...])
    sy = mm(mm(dh_ref[...], x), sw_ref[...])
    grad_sum = jnp.sum(jnp.abs(sx) + jnp.abs(sy))

    # ---- L1 |fused - GT_i|
    l1_sum = jnp.sum(jnp.abs(f - x))

    # ---- separable Gaussian window (VALID) as two banded matmuls — MXU
    gv = gv_ref[...]
    gh = gh_ref[...]

    def gconv(z):            # (H, W) -> (Ho, Wo)
        return mm(mm(gv, z), gh)

    mu_x = gconv(x)
    mu_f = gconv(f)
    ex2 = gconv(x * x)
    ef2 = gconv(f * f)
    exf = gconv(x * f)

    mu_x2 = mu_x * mu_x
    mu_f2 = mu_f * mu_f
    mu_xf = mu_x * mu_f
    sig_x = ex2 - mu_x2
    sig_f = ef2 - mu_f2
    sig_xf = exf - mu_xf

    v1 = 2.0 * sig_xf + c2
    v2 = sig_x + sig_f + c2
    num = (2.0 * mu_xf + c1) * v1
    den = (mu_x2 + mu_f2 + c1) * v2
    ssim_sum = jnp.sum(num / den)

    # ---- single lane-dense store of the three partial sums
    lane = jax.lax.broadcasted_iota(jnp.int32, (1, 1, 1, 128), 3)
    vec = jnp.where(lane == 0, grad_sum,
          jnp.where(lane == 1, ssim_sum,
          jnp.where(lane == 2, l1_sum, 0.0)))
    o_ref[...] = vec.astype(jnp.float32)


def fusion_loss_vif_5_avg(image_A, image_B, image_fused, GT, GT_2, GT_3, GT_4, GT_5):
    """JAX/Pallas equivalent of fusion_loss_vif_5_avg.forward (NCHW, C == 1)."""
    del image_A, image_B  # unused by the reference forward pass
    B, C, H, W = image_fused.shape
    assert C == 1, "Sobel weights are (1,1,3,3): single-channel inputs only"

    gts = jnp.stack([GT, GT_2, GT_3, GT_4, GT_5], axis=0)[:, :, 0]  # (5, B, H, W)
    gts = gts.astype(jnp.float32)
    f = image_fused[:, 0].astype(jnp.float32)                        # (B, H, W)

    ws = min(WINDOW_SIZE, H, W)          # real_size = min(window_size, H, W)
    Ho, Wo = H - ws + 1, W - ws + 1      # padd = 0 ("valid")
    gauss = np.array(_gaussian_1d(ws, SIGMA), np.float32)

    # dynamic value range L of img1 (= GT_i) for each ssim() call
    gmax = jnp.max(gts, axis=(1, 2, 3))
    gmin = jnp.min(gts, axis=(1, 2, 3))
    max_val = jnp.where(gmax > 128.0, 255.0, 1.0)
    min_val = jnp.where(gmin < -0.5, -1.0, 0.0)
    L = max_val - min_val
    c = jnp.stack([(0.01 * L) ** 2, (0.03 * L) ** 2], axis=-1)       # (5, 2)
    c = c.reshape(-1).astype(jnp.float32)                            # (10,)

    # constant banded matrices (built once on host)
    gv = jnp.asarray(_band(Ho, H, gauss, 0))                         # (Ho, H)
    gh = jnp.asarray(_band(Wo, W, gauss, 0).T)                       # (W, Wo)
    sh = jnp.asarray(_band(H, H, [1.0, 2.0, 1.0], -1))               # smooth rows
    dh = jnp.asarray(_band(H, H, [1.0, 0.0, -1.0], -1))              # diff rows
    sw = jnp.asarray(_band(W, W, [1.0, 2.0, 1.0], -1).T)             # smooth cols
    dw = jnp.asarray(_band(W, W, [-1.0, 0.0, 1.0], -1).T)            # diff cols

    grid_spec = pltpu.PrefetchScalarGridSpec(
        num_scalar_prefetch=0,
        grid=(B, 5),
        in_specs=[
            pl.BlockSpec(memory_space=pltpu.MemorySpace.SMEM),        # C1/C2 scalars
            pl.BlockSpec((1, 1, H, W), lambda b, i: (i, b, 0, 0)),    # GT_i
            pl.BlockSpec((1, H, W), lambda b, i: (b, 0, 0)),          # fused
            pl.BlockSpec((Ho, H), lambda b, i: (0, 0)),               # Gaussian vert band
            pl.BlockSpec((W, Wo), lambda b, i: (0, 0)),               # Gaussian horiz band
            pl.BlockSpec((H, H), lambda b, i: (0, 0)),                # Sobel smooth rows
            pl.BlockSpec((H, H), lambda b, i: (0, 0)),                # Sobel diff rows
            pl.BlockSpec((W, W), lambda b, i: (0, 0)),                # Sobel smooth cols
            pl.BlockSpec((W, W), lambda b, i: (0, 0)),                # Sobel diff cols
        ],
        out_specs=pl.BlockSpec((1, 1, 1, 128), lambda b, i: (b, i, 0, 0)),
    )

    out = pl.pallas_call(
        _fusion_loss_kernel,
        out_shape=jax.ShapeDtypeStruct((B, 5, 1, 128), jnp.float32),
        grid_spec=grid_spec,
        compiler_params=pltpu.CompilerParams(
            dimension_semantics=("parallel", "parallel")),
    )(c, gts, f, gv, gh, sh, dh, sw, dw)

    grad_sum = out[:, :, 0, 0]          # (B, 5)
    ssim_sum = out[:, :, 0, 1]
    l1_sum = out[:, :, 0, 2]

    m = jnp.sum(grad_sum, axis=0) / (B * H * W)          # (5,) mean Sobel gradient per GT
    ssim_v = jnp.sum(ssim_sum, axis=0) / (B * Ho * Wo)   # (5,) ssim(GT_i, fused)
    l1_v = jnp.sum(l1_sum, axis=0) / (B * H * W)         # (5,) mean |fused - GT_i|

    w = m / (m[0] + m[1]) + (m[2] + m[3] + m[4])         # weight_i per the reference code
    loss_SSIM = 10.0 * (1.0 - jnp.sum(w * ssim_v))
    loss_l1 = 20.0 * jnp.sum(l1_v)
    loss_gradient = 20.0 * jnp.sum(l1_v)                 # L_Grad5_avg returns the same L1 sum
    fusion_loss = loss_l1 + loss_gradient + loss_SSIM
    return fusion_loss, loss_gradient, loss_l1, loss_SSIM


# ---------------- pure-JAX reference (for correctness check) ----------------
def _ref_fusion_loss(image_A, image_B, image_fused, GT, GT_2, GT_3, GT_4, GT_5):
    del image_A, image_B

    def conv2d(x, w, pad):
        return jax.lax.conv_general_dilated(
            x, w, (1, 1), [(pad, pad), (pad, pad)],
            dimension_numbers=("NCHW", "OIHW", "NCHW"),
            precision=jax.lax.Precision.HIGHEST)

    kx = jnp.array(SOBEL_X, jnp.float32)[None, None]
    ky = jnp.array(SOBEL_Y, jnp.float32)[None, None]

    def sobel(x):
        return jnp.abs(conv2d(x, kx, 1)) + jnp.abs(conv2d(x, ky, 1))

    B, C, H, W = image_fused.shape
    ws = min(WINDOW_SIZE, H, W)
    g1 = jnp.array(_gaussian_1d(ws, SIGMA), jnp.float32)
    win = (g1[:, None] @ g1[None, :])[None, None]

    def ssim(img1, img2):
        max_val = jnp.where(jnp.max(img1) > 128.0, 255.0, 1.0)
        min_val = jnp.where(jnp.min(img1) < -0.5, -1.0, 0.0)
        Lv = max_val - min_val
        mu1, mu2 = conv2d(img1, win, 0), conv2d(img2, win, 0)
        mu1_sq, mu2_sq, mu1_mu2 = mu1 ** 2, mu2 ** 2, mu1 * mu2
        s1 = conv2d(img1 * img1, win, 0) - mu1_sq
        s2 = conv2d(img2 * img2, win, 0) - mu2_sq
        s12 = conv2d(img1 * img2, win, 0) - mu1_mu2
        C1, C2 = (0.01 * Lv) ** 2, (0.03 * Lv) ** 2
        v1, v2 = 2.0 * s12 + C2, s1 + s2 + C2
        ssim_map = ((2.0 * mu1_mu2 + C1) * v1) / ((mu1_sq + mu2_sq + C1) * v2)
        return jnp.mean(ssim_map)

    def l1(a, b):
        return jnp.mean(jnp.abs(a - b))

    A, Bb, Cc, D, E, Fd = GT, GT_2, GT_3, GT_4, GT_5, image_fused
    loss_l1 = 20.0 * (l1(Fd, A) + l1(Fd, Bb) + l1(Fd, Cc) + l1(Fd, D) + l1(Fd, E))
    loss_gradient = 20.0 * (l1(A, Fd) + l1(Bb, Fd) + l1(Cc, Fd) + l1(D, Fd) + l1(E, Fd))

    mA, mB, mC, mD, mE = (jnp.mean(sobel(z)) for z in (A, Bb, Cc, D, E))
    tail = mC + mD + mE
    wA = mA / (mA + mB) + tail
    wB = mB / (mA + mB) + tail
    wC = mC / (mA + mB) + tail
    wD = mD / (mA + mB) + tail
    wE = mE / (mA + mB) + tail
    inner = (wA * ssim(A, Fd) + wB * ssim(Bb, Fd) + wC * ssim(Cc, Fd)
             + wD * ssim(D, Fd) + wE * ssim(E, Fd))
    loss_SSIM = 10.0 * (1.0 - inner)
    fusion_loss = loss_l1 + loss_gradient + loss_SSIM
    return fusion_loss, loss_gradient, loss_l1, loss_SSIM


if __name__ == "__main__":
    key = jax.random.PRNGKey(0)
    ks = jax.random.split(key, 8)
    Bsz, Cch, H, W = 2, 1, 16, 16
    shape = (Bsz, Cch, H, W)
    image_A, image_B, image_F, GT, GT2, GT3, GT4, GT5 = (
        jax.random.uniform(k, shape, jnp.float32) for k in ks)

    out = jax.block_until_ready(
        fusion_loss_vif_5_avg(image_A, image_B, image_F, GT, GT2, GT3, GT4, GT5))
    ref = jax.block_until_ready(
        _ref_fusion_loss(image_A, image_B, image_F, GT, GT2, GT3, GT4, GT5))

    names = ("fusion_loss", "loss_gradient", "loss_l1", "loss_SSIM")
    for name, o, r in zip(names, out, ref):
        assert jnp.isfinite(o), (name, o)
        assert abs(float(o) - float(r)) <= 2e-3 * max(1.0, abs(float(r))), \
            (name, float(o), float(r))
    print("KERNEL_OK")
</pallas_src>

<mosaic_0001>
module attributes {stable_mosaic.version = 11 : i64} {
  func.func @_fusion_loss_kernel(%arg0: i32, %arg1: i32, %arg2: memref<10xf32, #tpu.memory_space<smem>>, %arg3: memref<1x1x16x16xf32, #tpu.memory_space<vmem>>, %arg4: memref<1x16x16xf32, #tpu.memory_space<vmem>>, %arg5: memref<6x16xf32, #tpu.memory_space<vmem>>, %arg6: memref<16x6xf32, #tpu.memory_space<vmem>>, %arg7: memref<16x16xf32, #tpu.memory_space<vmem>>, %arg8: memref<16x16xf32, #tpu.memory_space<vmem>>, %arg9: memref<16x16xf32, #tpu.memory_space<vmem>>, %arg10: memref<16x16xf32, #tpu.memory_space<vmem>>, %arg11: memref<1x1x1x128xf32, #tpu.memory_space<vmem>>) attributes {dimension_semantics = [#tpu.dimension_semantics<parallel>, #tpu.dimension_semantics<parallel>], iteration_bounds = array<i64: 2, 5>, scalar_prefetch = 0 : i64, scratch_operands = 0 : i64, tpu.core_type = #tpu.core_type<tc>, window_params = [{transform_indices = @transform_0, window_bounds = array<i64: 10>}, {transform_indices = @transform_1, window_bounds = array<i64: 1, 1, 16, 16>}, {transform_indices = @transform_2, window_bounds = array<i64: 1, 16, 16>}, {pipeline_mode = #tpu.pipeline_mode<synchronous>, transform_indices = @transform_3, window_bounds = array<i64: 6, 16>}, {pipeline_mode = #tpu.pipeline_mode<synchronous>, transform_indices = @transform_4, window_bounds = array<i64: 16, 6>}, {pipeline_mode = #tpu.pipeline_mode<synchronous>, transform_indices = @transform_5, window_bounds = array<i64: 16, 16>}, {pipeline_mode = #tpu.pipeline_mode<synchronous>, transform_indices = @transform_6, window_bounds = array<i64: 16, 16>}, {pipeline_mode = #tpu.pipeline_mode<synchronous>, transform_indices = @transform_7, window_bounds = array<i64: 16, 16>}, {pipeline_mode = #tpu.pipeline_mode<synchronous>, transform_indices = @transform_8, window_bounds = array<i64: 16, 16>}, {transform_indices = @transform_9, window_bounds = array<i64: 1, 1, 1, 128>}]} {
    %c2_i32 = arith.constant 2 : i32
    %0 = arith.muli %c2_i32, %arg1 : i32
    %1 = arith.index_cast %0 : i32 to index
    %2 = memref.load %arg2[%1] : memref<10xf32, #tpu.memory_space<smem>>
    %c2_i32_0 = arith.constant 2 : i32
    %3 = arith.muli %c2_i32_0, %arg1 : i32
    %c1_i32 = arith.constant 1 : i32
    %4 = arith.addi %3, %c1_i32 : i32
    %5 = arith.index_cast %4 : i32 to index
    %6 = memref.load %arg2[%5] : memref<10xf32, #tpu.memory_space<smem>>
    %c0 = arith.constant 0 : index
    %c0_1 = arith.constant 0 : index
    %c0_2 = arith.constant 0 : index
    %c0_3 = arith.constant 0 : index
    %7 = vector.load %arg3[%c0, %c0_1, %c0_2, %c0_3] : memref<1x1x16x16xf32, #tpu.memory_space<vmem>>, vector<1x1x16x16xf32>
    %8 = vector.shape_cast %7 : vector<1x1x16x16xf32> to vector<16x16xf32>
    %c0_4 = arith.constant 0 : index
    %c0_5 = arith.constant 0 : index
    %c0_6 = arith.constant 0 : index
    %9 = vector.load %arg4[%c0_4, %c0_5, %c0_6] : memref<1x16x16xf32, #tpu.memory_space<vmem>>, vector<1x16x16xf32>
    %10 = vector.shape_cast %9 : vector<1x16x16xf32> to vector<16x16xf32>
    %c0_7 = arith.constant 0 : index
    %c0_8 = arith.constant 0 : index
    %11 = vector.load %arg7[%c0_7, %c0_8] : memref<16x16xf32, #tpu.memory_space<vmem>>, vector<16x16xf32>
    %cst = arith.constant dense<0.000000e+00> : vector<16x16xf32>
    %12 = tpu.matmul %11, %8, %cst {dimension_numbers = #tpu.dot_dimension_numbers<[1], [0], [0], [1], [0, 0, 1, 1], [], []>, precision = #tpu.contract_precision<fp32>} : vector<16x16xf32>, vector<16x16xf32>, vector<16x16xf32> -> vector<16x16xf32>
    %c0_9 = arith.constant 0 : index
    %c0_10 = arith.constant 0 : index
    %13 = vector.load %arg10[%c0_9, %c0_10] : memref<16x16xf32, #tpu.memory_space<vmem>>, vector<16x16xf32>
    %cst_11 = arith.constant dense<0.000000e+00> : vector<16x16xf32>
    %14 = tpu.matmul %12, %13, %cst_11 {dimension_numbers = #tpu.dot_dimension_numbers<[1], [0], [0], [1], [0, 0, 1, 1], [], []>, precision = #tpu.contract_precision<fp32>} : vector<16x16xf32>, vector<16x16xf32>, vector<16x16xf32> -> vector<16x16xf32>
    %c0_12 = arith.constant 0 : index
    %c0_13 = arith.constant 0 : index
    %15 = vector.load %arg8[%c0_12, %c0_13] : memref<16x16xf32, #tpu.memory_space<vmem>>, vector<16x16xf32>
    %cst_14 = arith.constant dense<0.000000e+00> : vector<16x16xf32>
    %16 = tpu.matmul %15, %8, %cst_14 {dimension_numbers = #tpu.dot_dimension_numbers<[1], [0], [0], [1], [0, 0, 1, 1], [], []>, precision = #tpu.contract_precision<fp32>} : vector<16x16xf32>, vector<16x16xf32>, vector<16x16xf32> -> vector<16x16xf32>
    %c0_15 = arith.constant 0 : index
    %c0_16 = arith.constant 0 : index
    %17 = vector.load %arg9[%c0_15, %c0_16] : memref<16x16xf32, #tpu.memory_space<vmem>>, vector<16x16xf32>
    %cst_17 = arith.constant dense<0.000000e+00> : vector<16x16xf32>
    %18 = tpu.matmul %16, %17, %cst_17 {dimension_numbers = #tpu.dot_dimension_numbers<[1], [0], [0], [1], [0, 0, 1, 1], [], []>, precision = #tpu.contract_precision<fp32>} : vector<16x16xf32>, vector<16x16xf32>, vector<16x16xf32> -> vector<16x16xf32>
    %19 = math.absf %14 : vector<16x16xf32>
    %20 = math.absf %18 : vector<16x16xf32>
    %21 = arith.addf %19, %20 : vector<16x16xf32>
    %22 = vector.shape_cast %21 : vector<16x16xf32> to vector<1x16x16xf32>
    %cst_18 = arith.constant dense<0.000000e+00> : vector<1xf32>
    %23 = vector.multi_reduction <add>, %22, %cst_18 [1, 2] : vector<1x16x16xf32> to vector<1xf32>
    %24 = vector.shape_cast %23 : vector<1xf32> to vector<1x1x1xf32>
    %25 = vector.extract %24[0, 0, 0] : f32 from vector<1x1x1xf32>
    %26 = arith.subf %10, %8 : vector<16x16xf32>
    %27 = math.absf %26 : vector<16x16xf32>
    %28 = vector.shape_cast %27 : vector<16x16xf32> to vector<1x16x16xf32>
    %cst_19 = arith.constant dense<0.000000e+00> : vector<1xf32>
    %29 = vector.multi_reduction <add>, %28, %cst_19 [1, 2] : vector<1x16x16xf32> to vector<1xf32>
    %30 = vector.shape_cast %29 : vector<1xf32> to vector<1x1x1xf32>
    %31 = vector.extract %30[0, 0, 0] : f32 from vector<1x1x1xf32>
    %c0_20 = arith.constant 0 : index
    %c0_21 = arith.constant 0 : index
    %32 = vector.load %arg5[%c0_20, %c0_21] : memref<6x16xf32, #tpu.memory_space<vmem>>, vector<6x16xf32>
    %c0_22 = arith.constant 0 : index
    %c0_23 = arith.constant 0 : index
    %33 = vector.load %arg6[%c0_22, %c0_23] : memref<16x6xf32, #tpu.memory_space<vmem>>, vector<16x6xf32>
    %cst_24 = arith.constant dense<0.000000e+00> : vector<6x16xf32>
    %34 = tpu.matmul %32, %8, %cst_24 {dimension_numbers = #tpu.dot_dimension_numbers<[1], [0], [0], [1], [0, 0, 1, 1], [], []>, precision = #tpu.contract_precision<fp32>} : vector<6x16xf32>, vector<16x16xf32>, vector<6x16xf32> -> vector<6x16xf32>
    %cst_25 = arith.constant dense<0.000000e+00> : vector<6x6xf32>
    %35 = tpu.matmul %34, %33, %cst_25 {dimension_numbers = #tpu.dot_dimension_numbers<[1], [0], [0], [1], [0, 0, 1, 1], [], []>, precision = #tpu.contract_precision<fp32>} : vector<6x16xf32>, vector<16x6xf32>, vector<6x6xf32> -> vector<6x6xf32>
    %cst_26 = arith.constant dense<0.000000e+00> : vector<6x16xf32>
    %36 = tpu.matmul %32, %10, %cst_26 {dimension_numbers = #tpu.dot_dimension_numbers<[1], [0], [0], [1], [0, 0, 1, 1], [], []>, precision = #tpu.contract_precision<fp32>} : vector<6x16xf32>, vector<16x16xf32>, vector<6x16xf32> -> vector<6x16xf32>
    %cst_27 = arith.constant dense<0.000000e+00> : vector<6x6xf32>
    %37 = tpu.matmul %36, %33, %cst_27 {dimension_numbers = #tpu.dot_dimension_numbers<[1], [0], [0], [1], [0, 0, 1, 1], [], []>, precision = #tpu.contract_precision<fp32>} : vector<6x16xf32>, vector<16x6xf32>, vector<6x6xf32> -> vector<6x6xf32>
    %38 = arith.mulf %8, %8 : vector<16x16xf32>
    %cst_28 = arith.constant dense<0.000000e+00> : vector<6x16xf32>
    %39 = tpu.matmul %32, %38, %cst_28 {dimension_numbers = #tpu.dot_dimension_numbers<[1], [0], [0], [1], [0, 0, 1, 1], [], []>, precision = #tpu.contract_precision<fp32>} : vector<6x16xf32>, vector<16x16xf32>, vector<6x16xf32> -> vector<6x16xf32>
    %cst_29 = arith.constant dense<0.000000e+00> : vector<6x6xf32>
    %40 = tpu.matmul %39, %33, %cst_29 {dimension_numbers = #tpu.dot_dimension_numbers<[1], [0], [0], [1], [0, 0, 1, 1], [], []>, precision = #tpu.contract_precision<fp32>} : vector<6x16xf32>, vector<16x6xf32>, vector<6x6xf32> -> vector<6x6xf32>
    %41 = arith.mulf %10, %10 : vector<16x16xf32>
    %cst_30 = arith.constant dense<0.000000e+00> : vector<6x16xf32>
    %42 = tpu.matmul %32, %41, %cst_30 {dimension_numbers = #tpu.dot_dimension_numbers<[1], [0], [0], [1], [0, 0, 1, 1], [], []>, precision = #tpu.contract_precision<fp32>} : vector<6x16xf32>, vector<16x16xf32>, vector<6x16xf32> -> vector<6x16xf32>
    %cst_31 = arith.constant dense<0.000000e+00> : vector<6x6xf32>
    %43 = tpu.matmul %42, %33, %cst_31 {dimension_numbers = #tpu.dot_dimension_numbers<[1], [0], [0], [1], [0, 0, 1, 1], [], []>, precision = #tpu.contract_precision<fp32>} : vector<6x16xf32>, vector<16x6xf32>, vector<6x6xf32> -> vector<6x6xf32>
    %44 = arith.mulf %8, %10 : vector<16x16xf32>
    %cst_32 = arith.constant dense<0.000000e+00> : vector<6x16xf32>
    %45 = tpu.matmul %32, %44, %cst_32 {dimension_numbers = #tpu.dot_dimension_numbers<[1], [0], [0], [1], [0, 0, 1, 1], [], []>, precision = #tpu.contract_precision<fp32>} : vector<6x16xf32>, vector<16x16xf32>, vector<6x16xf32> -> vector<6x16xf32>
    %cst_33 = arith.constant dense<0.000000e+00> : vector<6x6xf32>
    %46 = tpu.matmul %45, %33, %cst_33 {dimension_numbers = #tpu.dot_dimension_numbers<[1], [0], [0], [1], [0, 0, 1, 1], [], []>, precision = #tpu.contract_precision<fp32>} : vector<6x16xf32>, vector<16x6xf32>, vector<6x6xf32> -> vector<6x6xf32>
    %47 = arith.mulf %35, %35 : vector<6x6xf32>
    %48 = arith.mulf %37, %37 : vector<6x6xf32>
    %49 = arith.mulf %35, %37 : vector<6x6xf32>
    %50 = arith.subf %40, %47 : vector<6x6xf32>
    %51 = arith.subf %43, %48 : vector<6x6xf32>
    %52 = arith.subf %46, %49 : vector<6x6xf32>
    %cst_34 = arith.constant 2.000000e+00 : f32
    %53 = vector.broadcast %cst_34 : f32 to vector<6x6xf32>
    %54 = arith.mulf %53, %52 : vector<6x6xf32>
    %55 = vector.broadcast %6 : f32 to vector<6x6xf32>
    %56 = arith.addf %54, %55 : vector<6x6xf32>
    %57 = arith.addf %50, %51 : vector<6x6xf32>
    %58 = vector.broadcast %6 : f32 to vector<6x6xf32>
    %59 = arith.addf %57, %58 : vector<6x6xf32>
    %cst_35 = arith.constant 2.000000e+00 : f32
    %60 = vector.broadcast %cst_35 : f32 to vector<6x6xf32>
    %61 = arith.mulf %60, %49 : vector<6x6xf32>
    %62 = vector.broadcast %2 : f32 to vector<6x6xf32>
    %63 = arith.addf %61, %62 : vector<6x6xf32>
    %64 = arith.mulf %63, %56 : vector<6x6xf32>
    %65 = arith.addf %47, %48 : vector<6x6xf32>
    %66 = vector.broadcast %2 : f32 to vector<6x6xf32>
    %67 = arith.addf %65, %66 : vector<6x6xf32>
    %68 = arith.mulf %67, %59 : vector<6x6xf32>
    %69 = arith.divf %64, %68 : vector<6x6xf32>
    %70 = vector.shape_cast %69 : vector<6x6xf32> to vector<1x6x6xf32>
    %cst_36 = arith.constant dense<0.000000e+00> : vector<1xf32>
    %71 = vector.multi_reduction <add>, %70, %cst_36 [1, 2] : vector<1x6x6xf32> to vector<1xf32>
    %72 = vector.shape_cast %71 : vector<1xf32> to vector<1x1x1xf32>
    %73 = vector.extract %72[0, 0, 0] : f32 from vector<1x1x1xf32>
    %74 = tpu.iota {dimensions = array<i32: 3>} : vector<1x1x1x128xi32>
    %c0_i32 = arith.constant 0 : i32
    %75 = vector.broadcast %c0_i32 : i32 to vector<1x1x1x128xi32>
    %76 = arith.cmpi eq, %74, %75 : vector<1x1x1x128xi32>
    %c1_i32_37 = arith.constant 1 : i32
    %77 = vector.broadcast %c1_i32_37 : i32 to vector<1x1x1x128xi32>
    %78 = arith.cmpi eq, %74, %77 : vector<1x1x1x128xi32>
    %c2_i32_38 = arith.constant 2 : i32
    %79 = vector.broadcast %c2_i32_38 : i32 to vector<1x1x1x128xi32>
    %80 = arith.cmpi eq, %74, %79 : vector<1x1x1x128xi32>
    %cst_39 = arith.constant 0.000000e+00 : f32
    %81 = vector.broadcast %31 : f32 to vector<1x1x1x128xf32>
    %82 = vector.broadcast %cst_39 : f32 to vector<1x1x1x128xf32>
    %83 = arith.select %80, %81, %82 : vector<1x1x1x128xi1>, vector<1x1x1x128xf32>
    %84 = vector.broadcast %73 : f32 to vector<1x1x1x128xf32>
    %85 = arith.select %78, %84, %83 : vector<1x1x1x128xi1>, vector<1x1x1x128xf32>
    %86 = vector.broadcast %25 : f32 to vector<1x1x1x128xf32>
    %87 = arith.select %76, %86, %85 : vector<1x1x1x128xi1>, vector<1x1x1x128xf32>
    %c0_40 = arith.constant 0 : index
    %c0_41 = arith.constant 0 : index
    %c0_42 = arith.constant 0 : index
    %c0_43 = arith.constant 0 : index
    %88 = vector.load %arg11[%c0_40, %c0_41, %c0_42, %c0_43] : memref<1x1x1x128xf32, #tpu.memory_space<vmem>>, vector<1x1x1x128xf32>
    tpu.vector_store %arg11[%c0_40, %c0_41, %c0_42, %c0_43], %87 {strides = array<i32>} : memref<1x1x1x128xf32, #tpu.memory_space<vmem>>, vector<1x1x1x128xf32>,
    return
  }
  func.func @transform_0(%arg0: i32, %arg1: i32) -> i32 {
    %c0_i32 = arith.constant 0 : i32
    %c0_i32_0 = arith.constant 0 : i32
    return %c0_i32 : i32
  }
  func.func @transform_1(%arg0: i32, %arg1: i32) -> (i32, i32, i32, i32) {
    %c0_i32 = arith.constant 0 : i32
    %c0_i32_0 = arith.constant 0 : i32
    %c0_i32_1 = arith.constant 0 : i32
    return %arg1, %arg0, %c0_i32, %c0_i32_0 : i32, i32, i32, i32
  }
  func.func @transform_2(%arg0: i32, %arg1: i32) -> (i32, i32, i32) {
    %c0_i32 = arith.constant 0 : i32
    %c0_i32_0 = arith.constant 0 : i32
    %c0_i32_1 = arith.constant 0 : i32
    return %arg0, %c0_i32, %c0_i32_0 : i32, i32, i32
  }
  func.func @transform_3(%arg0: i32, %arg1: i32) -> (i32, i32) {
    %c0_i32 = arith.constant 0 : i32
    %c0_i32_0 = arith.constant 0 : i32
    %c0_i32_1 = arith.constant 0 : i32
    return %c0_i32, %c0_i32_0 : i32, i32
  }
  func.func @transform_4(%arg0: i32, %arg1: i32) -> (i32, i32) {
    %c0_i32 = arith.constant 0 : i32
    %c0_i32_0 = arith.constant 0 : i32
    %c0_i32_1 = arith.constant 0 : i32
    return %c0_i32, %c0_i32_0 : i32, i32
  }
  func.func @transform_5(%arg0: i32, %arg1: i32) -> (i32, i32) {
    %c0_i32 = arith.constant 0 : i32
    %c0_i32_0 = arith.constant 0 : i32
    %c0_i32_1 = arith.constant 0 : i32
    return %c0_i32, %c0_i32_0 : i32, i32
  }
  func.func @transform_6(%arg0: i32, %arg1: i32) -> (i32, i32) {
    %c0_i32 = arith.constant 0 : i32
    %c0_i32_0 = arith.constant 0 : i32
    %c0_i32_1 = arith.constant 0 : i32
    return %c0_i32, %c0_i32_0 : i32, i32
  }
  func.func @transform_7(%arg0: i32, %arg1: i32) -> (i32, i32) {
    %c0_i32 = arith.constant 0 : i32
    %c0_i32_0 = arith.constant 0 : i32
    %c0_i32_1 = arith.constant 0 : i32
    return %c0_i32, %c0_i32_0 : i32, i32
  }
  func.func @transform_8(%arg0: i32, %arg1: i32) -> (i32, i32) {
    %c0_i32 = arith.constant 0 : i32
    %c0_i32_0 = arith.constant 0 : i32
    %c0_i32_1 = arith.constant 0 : i32
    return %c0_i32, %c0_i32_0 : i32, i32
  }
  func.func @transform_9(%arg0: i32, %arg1: i32) -> (i32, i32, i32, i32) {
    %c0_i32 = arith.constant 0 : i32
    %c0_i32_0 = arith.constant 0 : i32
    %c0_i32_1 = arith.constant 0 : i32
    return %arg0, %arg1, %c0_i32, %c0_i32_0 : i32, i32, i32, i32
  }
}

</mosaic_0001>

<bundles_post_ra>
// kernel: tpu_custom_call.1
= control target key start
LH: loop header
LB: loop body
LE: loop exit
PB: predicated region body
PF: predicated region fallthrough
CT: control target
= control target key end

     0   :  { %s9963_s0 = inlined_call_operand.vmem [shape: f32[10], index: 0, kind: input, shape index: {}]   ;;  %s9964_s1 = inlined_call_operand.hbm [shape: f32[5,2,16,16], index: 1, kind: input, shape index: {}]   ;;  %s9965_s2 = inlined_call_operand.hbm [shape: f32[2,16,16], index: 2, kind: input, shape index: {}]   ;;  %s9966_s3 = inlined_call_operand.hbm [shape: f32[6,16], index: 3, kind: input, shape index: {}]   ;;  %s9967_s4 = inlined_call_operand.vmem [shape: f32[16,6], index: 4, kind: input, shape index: {}]   ;;  %s9968_s5 = inlined_call_operand.vmem [shape: f32[16,16], index: 5, kind: input, shape index: {}]   ;;  %s9969_s6 = inlined_call_operand.vmem [shape: f32[16,16], index: 6, kind: input, shape index: {}]   ;;  %s9970_s7 = inlined_call_operand.vmem [shape: f32[16,16], index: 7, kind: input, shape index: {}]   ;;  %s9971_s8 = inlined_call_operand.hbm [shape: f32[16,16], index: 8, kind: input, shape index: {}]   ;;  %s9972_s9 = inlined_call_operand.hbm [shape: f32[2,5,1,128], index: 9, kind: output, shape index: {}]  }
   0x1   :  { %9994 = sst [smem:[#allocation26_spill]] %s9963_s0 }
   0x2   :  { %9995 = sst [smem:[#allocation27_spill]] %s9966_s3 }
   0x3   :  { %9996 = sst [smem:[#allocation28_spill]] %s9967_s4 }
   0x4   :  { %9997 = sst [smem:[#allocation29_spill]] %s9969_s6 }
   0x5   :  { %9998 = sst [smem:[#allocation30_spill]] %s9970_s7 }
   0x6   :  { %9999 = sst [smem:[#allocation31_spill]] %s9971_s8 }
   0x7   :  { %10000 = sst [smem:[#allocation32_spill]] %s9972_s9 }
   0x8   :  { %14 = vsyncpa [#allocation5], 0 }
   0x9   :  { %15 = vsyncpa [#allocation3], 0 }
   0xa   :  { %17 = vsyncpa [#allocation3 + $0x1], 0 }
   0xb   :  { %18 = vsyncpa [#allocation8], 0 }
   0xc   :  { %20 = vsyncpa [#allocation8 + $0x1], 0 }
   0xd   :  { %21 = vsyncpa [#allocation11], 0 }
   0xe   :  { %22 = vsyncpa [#allocation4], 0 }
   0xf   :  { %24 = vsyncpa [#allocation4 + $0x1], 0  ;;  %s9134_s30 = smov 0   ;;  %s9136_s10 = smov 0  }
  0x10   :  { %s9138_s11 = smov 0   ;;  %s9140_s12 = smov 0  }
  0x11   :  { %s9142_s13 = smov 0   ;;  %s9144_s14 = smov 0  }
  0x12   :  { %s9146_s15 = smov 0   ;;  %s9148_s16 = smov 0  }
  0x13   :  { %s9150_s17 = smov 0   ;;  %s9152_s18 = smov 0  }
  0x14   :  { %s9154_s19 = smov 0  }
  0x15 LB: > { %10001 = sst [smem:[#allocation19_spill]] %s9043_s12  ;;  %s9188_s20 = sadd.s32 4294967295, %s9071_s19   ;;  %s9071_s19 = sphi %s9154_s19, %s30_s19   ;;  %s9067_s18 = sphi %s9152_s18, %s10057_s18   ;;  %s9063_s17 = sphi %s9150_s17, %s10056_s17   ;;  %s9059_s16 = sphi %s9148_s16, %s10055_s16   ;;  %s9055_s15 = sphi %s9146_s15, %s10054_s15   ;;  %s9051_s14 = sphi %s9144_s14, %s10053_s14   ;;  %s9047_s13 = sphi %s9142_s13, %s10052_s13   ;;  %s9043_s12 = sphi %s9140_s12, %s10051_s12   ;;  %s9039_s11 = sphi %s9138_s11, %s10050_s11   ;;  %s9035_s10 = sphi %s9136_s10, %s10049_s10   ;;  %s9031_s30 = sphi %s9134_s30, %s10048_s30  }
  0x16   : > { %10002 = sst [smem:[#allocation20_spill]] %s9055_s15  ;;  %s7344_s21 = sadd.s32 4294967294, %s9071_s19  }
  0x17   : > { %10003 = sst [smem:[#allocation21_spill]] %s9059_s16  ;;  %p85_p0 = scmp.ne.s32.totalorder %s9047_s13, %s9043_s12 }
  0x18   : > { %p9977_p1 = scmp.eq.s32.totalorder %s9188_s20, 0  ;;  %p111_p2 = scmp.ne.s32.totalorder %s9035_s10, %s9031_s30 }
  0x19   : > { %p269_p5 = scmp.eq.s32.totalorder %s7344_s21, 9  ;;  %p7345_p7 = scmp.ge.s32.totalorder %s9071_s19, 1 }
  0x1a   : > { %p9198_p4 = por %p9977_p1, %p85_p0  ;;  %p9204_p6 = por %p111_p2, %p9977_p1 }
  0x1b   : > { %p9209_p8 = por %p269_p5, %p85_p0  ;;  %p276_p9 = scmp.lt.s32.totalorder %s9071_s19, 11 }
  0x1c   : > { %s10004_s22 = scalar_select %p9198_p4, 1, 0 }
  0x1d   : > { %s10005_s23 = scalar_select %p9204_p6, 1, 0 }
  0x1e   : > { %s10006_s24 = scalar_select %p9209_p8, 1, 0 }
  0x1f   : > { %p9214_p10 = pnand %p7345_p7, %p276_p9  ;;  %s9073_s26 = smov [#allocation9]  }
  0x20   : > { %10007 = sst [smem:[#allocation22_spill]] %s10006_s24  ;;  %s300_s27 = sshll.u32 %s9073_s26, 4  ;;  %s301_s27 = int_to_ptr.vmem [resolvable:$true] %s300_s27 }
  0x21   : > { %s10008_s25 = scalar_select %p9214_p10, 1, 0 }
  0x22   : > { %p8673_p11 = pneg %p9214_p10  ;;  %s10010_s0 = sld [smem:[#allocation26_spill]] }
  0x23   : > { %s10011_s3 = sld [smem:[#allocation27_spill]] }
  0x24   : > { %p9222_p12 = pnand %p8673_p11, %p9977_p1 }
  0x26   : > { %p9239_p0 = pneg %p9222_p12 }
  0x28   : > { %s289_s21 = sshll.u32 %s10010_s0, 4  ;;  %s9229_s21 = int_to_ptr.vmem [resolvable:$true] %s289_s21 }
  0x29   : > { %s8802_s9 = scalar_lea.hbm %s10011_s3, 128 }
  0x2a   : > { %p8803_p13 = scmp.ne.s32.totalorder %s10011_s3, %s8802_s9  ;;  %p8809_p7 = scmp.lt.u32.totalorder %s8802_s9, %s10011_s3 }
  0x2c   : > { %p8805_p2 = pnand %p9239_p0, %p8803_p13 }
  0x2e   : > { %p8806_p5 = pneg %p8805_p2 }
  0x30   : > { %p8811_p9 = pnand %p8809_p7, %p8806_p5 }
  0x32   : > { %8814 = shalt.err (!%p8811_p9)
}
  0x33   : > { %s8815_s12 = scalar_lea.vmem %s301_s27, 128  ;;  %p8823_p8 = scmp.lt.s32.totalorder %s301_s27, %s301_s27 }
  0x34   : > { %p8816_p11 = scmp.ne.s32.totalorder %s301_s27, %s8815_s12  ;;  %p8824_p6 = scmp.lt.s32.totalorder %s8815_s12, %s8815_s12 }
  0x36   : > { %p8818_p1 = pnand %p8816_p11, %p9239_p0  ;;  %p8825_p4 = por %p8824_p6, %p8823_p8 }
  0x38   : > { %p8819_p3 = pneg %p8818_p1 }
  0x3a   : > { %p8826_p10 = pnand %p8825_p4, %p8819_p3 }
  0x3c   : > { %8829 = shalt.err (!%p8826_p10)
}
  0x3d   : > { %8679 = dma.hbm_to_vmem [thread:$0]  (!%p9222_p12), %s10011_s3, 128, %s301_s27, [#allocation8]  }
  0x3e   : > { %s8830_s9 = scalar_lea.vmem %s9229_s21, 16  ;;  %p8838_p5 = scmp.lt.s32.totalorder %s9229_s21, %s9229_s21 }
  0x3f   : > { %p8831_p13 = scmp.ne.s32.totalorder %s9229_s21, %s8830_s9  ;;  %p8839_p6 = scmp.lt.s32.totalorder %s8830_s9, %s8830_s9 }
  0x41   : > { %p8833_p2 = pnand %p8831_p13, %p9239_p0  ;;  %p8840_p3 = por %p8839_p6, %p8838_p5 }
  0x43   : > { %p8834_p1 = pneg %p8833_p2 }
  0x45   : > { %p8841_p4 = pnand %p8840_p3, %p8834_p1 }
  0x47   : > { %8844 = shalt.err (!%p8841_p4)
}
  0x48   : > { %s9074_s26 = smov [#allocation2]   ;;  %s9075_s29 = smov [#allocation10]  }
  0x49   : > { %8676 = dma.vmem_to_smem (!%p9222_p12), %s9229_s21, 16, %s9074_s26, [#allocation5]  }
  0x4a   : > { %s322_s30 = sshll.u32 %s9075_s29, 4  ;;  %s10013_s8 = sld [smem:[#allocation31_spill]]  ;;  %s323_s30 = int_to_ptr.vmem [resolvable:$true] %s322_s30 }
  0x50   : > { %s8845_s16 = scalar_lea.hbm %s10013_s8, 256 }
  0x51   : > { %p8846_p8 = scmp.ne.s32.totalorder %s10013_s8, %s8845_s16  ;;  %p8852_p9 = scmp.lt.u32.totalorder %s8845_s16, %s10013_s8 }
  0x53   : > { %p8848_p10 = pnand %p8846_p8, %p9239_p0 }
  0x55   : > { %p8849_p7 = pneg %p8848_p10 }
  0x57   : > { %p8854_p11 = pnand %p8852_p9, %p8849_p7 }
  0x59   : > { %8857 = shalt.err (!%p8854_p11)
}
  0x5a   : > { %s8858_s21 = scalar_lea.vmem %s323_s30, 256  ;;  %p8866_p5 = scmp.lt.s32.totalorder %s323_s30, %s323_s30 }
  0x5b   : > { %p8859_p13 = scmp.ne.s32.totalorder %s323_s30, %s8858_s21  ;;  %p8867_p6 = scmp.lt.s32.totalorder %s8858_s21, %s8858_s21 }
  0x5d   : > { %p8861_p2 = pnand %p8859_p13, %p9239_p0  ;;  %p8868_p3 = por %p8867_p6, %p8866_p5 }
  0x5f   : > { %p8862_p1 = pneg %p8861_p2 }
  0x61   : > { %p8869_p4 = pnand %p8868_p3, %p8862_p1 }
  0x63   : > { %8872 = shalt.err (!%p8869_p4)
}
  0x64   : > { %s9981_s0 = smov 128   ;;  %s9983_s3 = smov 8  }
  0x65   : > { %8682 = dma.hbm_to_vmem [thread:$0]  (!%p9222_p12), %s10013_s8, 256, %s323_s30, [#allocation11], %s9981_s0, %s9981_s0, %s9983_s3  }
  0x66   : > { %s39_s29 = sadd.s32 1, %s9063_s17  ;;  %s42_s27 = sadd.s32 1, %s9067_s18 }
  0x67   : > { %p40_p0 = scmp.ge.s32.totalorder %s39_s29, 5  ;;  %s72_s12 = sadd.s32 1, %s9051_s14 }
  0x68   : > { %p79_p8 = scmp.ne.s32.totalorder %s9051_s14, %s9047_s13  ;;  %p9993_p10 = scmp.eq.s32.totalorder %s9071_s19, 0 }
  0x69   : > { %s10059_s29 = smov (%p40_p0, %s39_s29), 0  ;;  %s10061_s27 = smov (!%p40_p0, %s42_s27), %s9067_s18 }
  0x6a   : > { %10014 = sst [smem:[#allocation23_spill]] %s10059_s29  ;;  %s67_s28 = ssub.s32 %s9063_s17, %s10059_s29 }
  0x6b   : > { %p44_p7 = scmp.ge.s32.totalorder %s10061_s27, 2  ;;  %p10015_p9 = scmp.eq.s32.totalorder %s9188_s20, 9 }
  0x6c   : > { %p9304_p12 = por %p9993_p10, %p79_p8  ;;  %p9992_p13 = scmp.lt.s32.totalorder %s9071_s19, 10 }
  0x6d   : > { %p9298_p11 = por %p10015_p9, %p79_p8  ;;  %s10063_s27 = smov (%p44_p7, %s10061_s27), 0 }
  0x6e   : > { %10019 = sst [smem:[#allocation25_spill]] %s10063_s27  ;;  %s336_s24 = sand.u32 1, %s9051_s14  }
  0x6f   : > { %s10016_s16 = scalar_select %p9298_p11, 1, 0 }
  0x70   : > { %s7351_s9 = sshll.u32 %s9067_s18, 1  ;;  %s9315_s21 = ssub.s32 %s9067_s18, %s10063_s27 }
  0x71   : > { %10017 = sst [smem:[#allocation24_spill]] %s10016_s16  ;;  %s69_s15 = sor.u32 %s9315_s21, %s67_s28 }
  0x72   : > { %p70_p1 = scmp.eq.s32.totalorder %s69_s15, 0  ;;  %s7350_s26 = sshll.u32 %s336_s24, 4 }
  0x73   : > { %s7352_s0 = sshll.u32 %s9063_s17, 2  ;;  %s340_s29 = scalar_lea.vmem [#allocation6], %s7350_s26 }
  0x74   : > { %s9321_s3 = scalar_select %p70_p1, %s9051_s14, %s72_s12  }
  0x75   : > { %s346_s8 = sadd.s32 %s7352_s0, %s7351_s9  ;;  %s349_s16 = sshll.u32 %s340_s29, 4  ;;  %s9323_s16 = int_to_ptr.vmem [resolvable:$true] %s349_s16 }
  0x76   : > { %s7353_s4 = sshll.u32 %s346_s8, 7  ;;  %p9334_p5 = pnand %p9992_p13, %p9304_p12 }
  0x77   : > { %s9328_s27 = scalar_lea.hbm %s9964_s1, %s7353_s4  ;;  %s359_s8 = sand.u32 1, %s9071_s19  }
  0x78   : > { %s9339_s0 = scalar_lea.sflag [#allocation3], %s336_s24  ;;  %s8873_s29 = scalar_lea.hbm %s9328_s27, 256 }
  0x79   : > { %p8874_p6 = scmp.ne.s32.totalorder %s9328_s27, %s8873_s29  ;;  %p8875_p3 = pneg %p9334_p5 }
  0x7a   : > { %s8878_s7 = scalar_lea.hbm %s9964_s1, 2560  ;;  %p8879_p8 = scmp.lt.u32.totalorder %s9328_s27, %s9964_s1 }
  0x7b   : > { %p8876_p4 = pnand %p8875_p3, %p8874_p6  ;;  %p8880_p7 = scmp.lt.u32.totalorder %s8878_s7, %s8873_s29 }
  0x7c   : > { %p8882_p12 = scmp.lt.u32.totalorder %s8873_s29, %s9328_s27 }
  0x7d   : > { %p8877_p0 = pneg %p8876_p4  ;;  %p8881_p9 = por %p8880_p7, %p8879_p8 }
  0x7f   : > { %p8883_p1 = por %p8882_p12, %p8881_p9 }
  0x81   : > { %p8884_p13 = pnand %p8883_p1, %p8877_p0 }
  0x83   : > { %8887 = shalt.err (!%p8884_p13)
}
  0x84   : > { %s8888_s24 = scalar_lea.vmem %s9323_s16, 256  ;;  %s9078_s9 = smov [#allocation6]  }
  0x85   : > { %p8889_p6 = scmp.ne.s32.totalorder %s9323_s16, %s8888_s24  ;;  %s8893_s15 = sshll.u32 %s9078_s9, 4  ;;  %s8894_s15 = int_to_ptr.vmem [resolvable:$false] %s8893_s15 }
  0x86   : > { %s8895_s26 = scalar_lea.vmem %s8894_s15, 512  ;;  %p8896_p2 = scmp.lt.s32.totalorder %s9323_s16, %s8894_s15 }
  0x87   : > { %p8891_p4 = pnand %p8889_p6, %p8875_p3  ;;  %p8897_p8 = scmp.lt.s32.totalorder %s8895_s26, %s8888_s24 }
  0x89   : > { %p8892_p10 = pneg %p8891_p4  ;;  %p8898_p7 = por %p8897_p8, %p8896_p2 }
  0x8b   : > { %p8899_p9 = pnand %p8898_p7, %p8892_p10 }
  0x8d   : > { %8902 = shalt.err (!%p8899_p9)
}
  0x8e   : > { %s10021_s29 = smov 8   ;;  %s10022_s4 = smov 128  }
  0x8f   : > { %8686 = dma.hbm_to_vmem [thread:$0]  (!%p9334_p5), %s9328_s27, 256, %s9323_s16, %s9339_s0, %s10022_s4, %s10022_s4, %s10021_s29  }
  0x90   : > { %s98_s6 = sadd.s32 1, %s9039_s11  ;;  %p105_p10 = scmp.ne.s32.totalorder %s9039_s11, %s9035_s10 }
  0x91   : > { %p10023_p13 = scmp.eq.s32.totalorder %s9315_s21, 0  ;;  %p10024_p2 = scmp.eq.s32.totalorder %s9071_s19, 0 }
  0x92   : > { %s361_s7 = sand.u32 1, %s9039_s11   ;;  %s7367_s28 = sshll.u32 %s9067_s18, 8 }
  0x93   : > { %s9376_s12 = scalar_select %p10023_p13, %s9039_s11, %s98_s6  }
  0x94   : > { %p107_p3 = por %p105_p10, %p10024_p2  ;;  %s7354_s30 = sshll.u32 %s361_s7, 4 }
  0x95   : > { %s9385_s15 = scalar_lea.hbm %s9965_s2, %s7367_s28  ;;  %p10025_p0 = scmp.lt.s32.totalorder %s9071_s19, 10 }
  0x96   : > { %s363_s16 = scalar_lea.vmem [#allocation7], %s7354_s30  ;;  %s9397_s0 = scalar_lea.sflag [#allocation8], %s359_s8 }
  0x97   : > { %p9389_p5 = pnand %p10025_p0, %p107_p3  ;;  %s370_s21 = sshll.u32 %s363_s16, 4  ;;  %s9393_s21 = int_to_ptr.vmem [resolvable:$true] %s370_s21 }
  0x98   : > { %s8903_s26 = scalar_lea.hbm %s9385_s15, 256  ;;  %s8908_s28 = scalar_lea.hbm %s9965_s2, 512 }
  0x99   : > { %p8904_p12 = scmp.ne.s32.totalorder %s9385_s15, %s8903_s26  ;;  %p8905_p1 = pneg %p9389_p5 }
  0x9a   : > { %p8909_p8 = scmp.lt.u32.totalorder %s9385_s15, %s9965_s2  ;;  %p8910_p7 = scmp.lt.u32.totalorder %s8908_s28, %s8903_s26 }
  0x9b   : > { %p8906_p6 = pnand %p8905_p1, %p8904_p12  ;;  %p8912_p10 = scmp.lt.u32.totalorder %s8903_s26, %s9385_s15 }
  0x9c   : > { %p8911_p9 = por %p8910_p7, %p8909_p8 }
  0x9d   : > { %p8907_p4 = pneg %p8906_p6 }
  0x9e   : > { %p8913_p13 = por %p8912_p10, %p8911_p9 }
  0xa0   : > { %p8914_p2 = pnand %p8913_p13, %p8907_p4 }
  0xa2   : > { %8917 = shalt.err (!%p8914_p2)
}
  0xa3   : > { %s8918_s8 = scalar_lea.vmem %s9393_s21, 256  ;;  %s9079_s9 = smov [#allocation7]  }
  0xa4   : > { %p8919_p3 = scmp.ne.s32.totalorder %s9393_s21, %s8918_s8  ;;  %s8923_s16 = sshll.u32 %s9079_s9, 4  ;;  %s8924_s16 = int_to_ptr.vmem [resolvable:$false] %s8923_s16 }
  0xa5   : > { %s8925_s6 = scalar_lea.vmem %s8924_s16, 512  ;;  %p8926_p6 = scmp.lt.s32.totalorder %s9393_s21, %s8924_s16 }
  0xa6   : > { %p8921_p0 = pnand %p8919_p3, %p8905_p1  ;;  %p8927_p8 = scmp.lt.s32.totalorder %s8925_s6, %s8918_s8 }
  0xa8   : > { %p8922_p12 = pneg %p8921_p0  ;;  %p8928_p7 = por %p8927_p8, %p8926_p6 }
  0xaa   : > { %p8929_p9 = pnand %p8928_p7, %p8922_p12 }
  0xac   : > { %8932 = shalt.err (!%p8929_p9)
}
  0xad   : > { %8689 = dma.hbm_to_vmem [thread:$0]  (!%p9389_p5), %s9385_s15, 256, %s9393_s21, %s9397_s0, %s10022_s4, %s10022_s4, %s10021_s29  }
  0xae   : > { %p10027_p1 = scmp.ne.s32.totalorder %s10008_s25, 0 }
  0xaf   : > { %p10028_p4 = scmp.eq.s32.totalorder (!%p10027_p1), %s9188_s20, 0 }
  0xb0   : > { %382 = sbr.rel (%p10027_p1) target bundleno = 1229 (0x4cd), region = 56 }
  0xb7   : > { %9006 = dma.done.wait (%p10028_p4), [#allocation5], 16   ;;  %p10029_p10 = pmov %p10028_p4 }
  0xb8   : > { %s9435_s26 = sand.u32 1, %s9047_s13   ;;  %p10030_p5 = scmp.ne.s32.totalorder %s10004_s22, 0 }
  0xb9   : > { %9008 = vsyncadd (%p10029_p10), [#allocation5], 4294967280  ;;  %s7359_s27 = sshll.u32 %s9435_s26, 4  ;;  %s389_s7 = scalar_lea.sflag [#allocation3], %s9435_s26 }
  0xba   : > { %s9439_s28 = scalar_lea.vmem [#allocation6], %s7359_s27 }
  0xbb   : > { %9010 = dma.done.wait (%p10030_p5), %s389_s7, 256  }
  0xbc   : > { %9012 = vsyncadd (%p10030_p5), %s389_s7, 4294967040  ;;  %s397_s25 = sand.u32 1, %s9188_s20   ;;  %s399_s29 = sand.u32 1, %s9035_s10  }
  0xbd   : > { %s9447_s4 = sshll.u32 %s399_s29, 4  ;;  %s398_s15 = scalar_lea.sflag [#allocation8], %s397_s25 }
  0xbe   : > { %s401_s21 = scalar_lea.vmem [#allocation7], %s9447_s4  ;;  %p10031_p13 = scmp.ne.s32.totalorder %s10005_s23, 0 }
  0xc0   : > { %9014 = dma.done.wait (%p10031_p13), %s398_s15, 256  }
  0xc1   : > { %9016 = vsyncadd (%p10031_p13), %s398_s15, 4294967040  ;;  %p10032_p2 = pmov %p10028_p4 }
  0xc3   : > { %9018 = dma.done.wait (%p10032_p2), [#allocation8], 128   ;;  %p10033_p3 = pmov %p10032_p2 }
  0xc4   : > { %p10034_p0 = pmov %p10032_p2 }
  0xc5   : > { %9020 = vsyncadd (%p10033_p3), [#allocation8], 4294967168 }
  0xc6   : > { %9022 = dma.done.wait (%p10034_p0), [#allocation11], 256   ;;  %p10035_p12 = pmov %p10034_p0 }
  0xc8   : > { %9024 = vsyncadd (%p10035_p12), [#allocation11], 4294967040 }
  0xc9   : > { %414 = sfence }
  0xca   : > { %v9463_v0 = vld [vmem:[%s9439_s28] sm:$0xff]  ;;  %v9466_v1 = vld [vmem:[%s9439_s28 + $0x8] sm:$0xff]  ;;  %vm459_vm0 = vcmask 130048   ;;  %s10036_s8 = sld [smem:[#allocation29_spill]]  ;;  %v9080_v49 = vmov 0.0|0.0   ;;  %vm9081_vm1 = vmmov 0  }
  0xcb   : > { %v457_v2 = vld [vmem:[%s9968_s5] sm:$0xff]  ;;  %v467_v3 = vand.u32 4294901760, %v9463_v0  ;;  %v470_v4 = vand.u32 4294901760, %v9466_v1  ;;  %v458_v6 = vld [vmem:[%s9968_s5 + $0x8] sm:$0xff]  ;;  %v9082_v52 = vmov 0.0   ;;  %s10037_s7 = sld [smem:[#allocation30_spill]] }
  0xcc   : > { %v461_v5 = vsel %vm459_vm0, %v457_v2, 0  ;;  %v464_v8 = vsel %vm459_vm0, %v458_v6, 0  ;;  %v2532_v44 = vld [vmem:[#allocation9] sm:$0x3f]  ;;  %v9559_v54 = vld [vmem:[%s401_s21 + $0x8] sm:$0xff]  ;;  %s10039_s20 = sld [smem:[#allocation20_spill]] }
  0xcd   : > { %v533_v7 = vand.u32 4294901760, %v461_v5  ;;  %v9478_v9 = vpack.c.bf16 %v470_v4, %v467_v3  ;;  %v543_v10 = vand.u32 4294901760, %v464_v8  ;;  %v555_v11 = vsub.f32 %v9463_v0, %v467_v3  ;;  %v9555_v53 = vld [vmem:[%s401_s21] sm:$0xff]  ;;  %s10038_s21 = sld [smem:[#allocation28_spill]]  ;;  %s10040_s9 = sld [smem:[#allocation21_spill]] }
  0xce   : > { %v562_v12 = vsub.f32 %v9466_v1, %v470_v4  ;;  %v2536_v45 = vsel %vm459_vm0, %v2532_v44, 0  ;;  %v3460_v55 = vand.u32 4294901760, %v9555_v53  ;;  %v3463_v56 = vand.u32 4294901760, %v9559_v54  ;;  %v968_v4 = vld [vmem:[#allocation10] sm:$0xff]  ;;  %s448_s15 = scalar_lea.vmem [#allocation12], %s9435_s26 }
  0xcf   : > { %v534_v13 = vsub.f32 %v461_v5, %v533_v7  ;;  %8233 = vmatprep.subr.bf16.mxu0 %v9478_v9  ;;  %v544_v14 = vsub.f32 %v464_v8, %v543_v10  ;;  %v556_v15 = vand.u32 4294901760, %v555_v11  ;;  %v9518_v46 = vand.u32 4294901760, %v2536_v45  ;;  %v969_v5 = vld [vmem:[#allocation10 + $0x8] sm:$0xff]  ;;  %s7207_s22 = sshll.u32 %s448_s15, 4  ;;  %s9902_s22 = int_to_ptr.vmem [resolvable:$true] %s7207_s22 }
  0xd0   : > { %v563_v16 = vand.u32 4294901760, %v562_v12  ;;  %8235 = vmatpush3.bf16.msra.mxu0 %v9478_v9  ;;  %v9486_v28 = vpack.c.bf16 %v562_v12, %v555_v11  ;;  %v1478_v30 = vld [vmem:[%s10036_s8] sm:$0xff]  ;;  %v1479_v32 = vld [vmem:[%s10036_s8 + $0x8] sm:$0xff]  ;;  %v3538_v57 = vsub.f32 %v9555_v53, %v3460_v55  ;;  %v3545_v58 = vsub.f32 %v9559_v54, %v3463_v56 }
  0xd1   : > { %v535_v17 = vand.u32 4294901760, %v534_v13  ;;  %v545_v18 = vand.u32 4294901760, %v544_v14  ;;  %v557_v19 = vsub.f32 %v555_v11, %v556_v15  ;;  %v1481_v31 = vsel %vm459_vm0, %v1478_v30, 0 }
  0xd2   : > { %v564_v20 = vsub.f32 %v562_v12, %v563_v16  ;;  %v9493_v29 = vpack.c.bf16 %v563_v16, %v556_v15  ;;  %v1553_v33 = vand.u32 4294901760, %v1481_v31  ;;  %v1484_v34 = vsel %vm459_vm0, %v1479_v32, 0 }
  0xd3   : > { %v536_v21 = vsub.f32 %v534_v13, %v535_v17  ;;  %v546_v22 = vsub.f32 %v544_v14, %v545_v18  ;;  %v558_v23 = vand.u32 4294901760, %v557_v19  ;;  %v1563_v35 = vand.u32 4294901760, %v1484_v34  ;;  %s8654_s16 = smul.u32 5, %s10040_s9  ;;  %s8933_s9 = scalar_lea.vmem %s9902_s22, 16 }
  0xd4   : > { %v565_v24 = vand.u32 4294901760, %v564_v20  ;;  %v1554_v36 = vsub.f32 %v1481_v31, %v1553_v33  ;;  %v9523_v47 = vsub.f32 %v2536_v45, %v9518_v46  ;;  %v3539_v59 = vand.u32 4294901760, %v3538_v57  ;;  %p8934_p6 = scmp.ne.s32.totalorder %s9902_s22, %s8933_s9 }
  0xd5   : > { %v537_v25 = vand.u32 4294901760, %v536_v21  ;;  %v547_v26 = vand.u32 4294901760, %v546_v22  ;;  %v1564_v37 = vsub.f32 %v1484_v34, %v1563_v35  ;;  %v3546_v60 = vand.u32 4294901760, %v3545_v58  ;;  %s7203_s25 = sadd.s32 %s10039_s20, %s8654_s16  ;;  %s9083_s16 = smov [#allocation12]  }
  0xd6   : > { %v9484_v27 = vpack.c.bf16 %v565_v24, %v558_v23  ;;  %v1555_v38 = vand.u32 4294901760, %v1554_v36  ;;  %v9526_v48 = vand.u32 4294901760, %v9523_v47  ;;  %v3540_v61 = vsub.f32 %v3538_v57, %v3539_v59  ;;  %s7364_s29 = sshll.u32 %s7203_s25, 4  ;;  %p8935_p8 = pnand %p8934_p6, %p9298_p11 }
  0xd7   : > { %7648 = vmatprep.mubr.f32.mxu0 %v537_v25  ;;  %v1565_v39 = vand.u32 4294901760, %v1564_v37  ;;  %v3547_v62 = vsub.f32 %v3545_v58, %v3546_v60  ;;  %v8365_v63 = vpack.c.bf16 %v3463_v56, %v3460_v55  ;;  %v980_v8 = vand.u32 4294901760, %v969_v5 }
  0xd8   : > { %7649 = vmatmul.mubr.f32.vlgmr.msra.gmra.mrb[0].mxu0 %v547_v26  ;;  %8237 = vmatprep.subr.bf16.mxu0 %v9484_v27  ;;  %v1556_v40 = vsub.f32 %v1554_v36, %v1555_v38  ;;  %v2608_v50 = vsub.f32 %v9523_v47, %v9526_v48  ;;  %v3541_v2 = vand.u32 4294901760, %v3540_v61  ;;  %v8371_v16 = vpack.c.bf16 %v3545_v58, %v3538_v57  ;;  %p8936_p7 = pneg %p8935_p8 }
  0xd9   : > { %8239 = vmatpush3.bf16.msra.mxu0 %v9484_v27  ;;  %7655 = vmatprep.mubr.f32.mxu0 %v533_v7  ;;  %v1566_v41 = vsub.f32 %v1564_v37, %v1565_v39  ;;  %v3548_v3 = vand.u32 4294901760, %v3547_v62  ;;  %v1072_v11 = vsub.f32 %v969_v5, %v980_v8  ;;  %v4380_v21 = vmul.f32 %v9463_v0, %v9463_v0 }
  0xda   : > { %8241 = vmatprep.subr.bf16.mxu0 %v9486_v28  ;;  %v1557_v42 = vand.u32 4294901760, %v1556_v40  ;;  %v9532_v51 = vand.u32 4294901760, %v2608_v50  ;;  %v4381_v22 = vmul.f32 %v9466_v1, %v9466_v1  ;;  %v8377_v23 = vpack.c.bf16 %v3546_v60, %v3539_v59 }
  0xdb   : > { %v1567_v43 = vand.u32 4294901760, %v1566_v41  ;;  %v8368_v6 = vpack.c.bf16 %v3548_v3, %v3541_v2  ;;  %v4383_v24 = vand.u32 4294901760, %v4380_v21  ;;  %v6226_v62 = vmul.f32 %v9555_v53, %v9463_v0 }
  0xdc   : > { %v4386_v25 = vand.u32 4294901760, %v4381_v22  ;;  %vm7169_vm2 = vcmask 46080  }
  0xdd   : > { %v4461_v26 = vsub.f32 %v4380_v21, %v4383_v24  ;;  %v6229_v3 = vand.u32 4294901760, %v6226_v62 }
  0xdf   : > { %v9665_v5 = vsub.f32 %v6226_v62, %v6229_v3 }
  0xe0   : > { %7656 = vmatmul.mubr.f32.vlgmr.msra.gmra.mrb[0].mxu0 %v543_v10 }
  0xe1   : > { %8243 = vmatpush3.bf16.msra.mxu0 %v9486_v28  ;;  %7662 = vmatprep.mubr.f32.mxu0 %v534_v13  ;;  %v1073_v13 = vand.u32 4294901760, %v1072_v11  ;;  %v6308_v0 = vand.u32 4294901760, %v9665_v5 }
  0xe2   : > { %8245 = vmatprep.subr.bf16.mxu0 %v9478_v9 }
  0xe3   : > { %v1074_v15 = vsub.f32 %v1072_v11, %v1073_v13 }
  0xe8   : > { %7663 = vmatmul.mubr.f32.vlgmr.msra.gmra.mrb[0].mxu0 %v544_v14 }
  0xe9   : > { %8247 = vmatpush3.bf16.msra.mxu0 %v9478_v9  ;;  %7669 = vmatprep.mubr.f32.mxu0 %v535_v17 }
  0xea   : > { %8249 = vmatprep.subr.bf16.mxu0 %v9493_v29 }
  0xf0   : > { %7670 = vmatmul.mubr.f32.vlgmr.msra.gmra.mrb[0].mxu0 %v545_v18  ;;  %v1075_v18 = vand.u32 4294901760, %v1074_v15 }
  0xf1   : > { %8251 = vmatpush3.bf16.msra.mxu0 %v9493_v29  ;;  %7676 = vmatprep.mubr.f32.mxu0 %v533_v7 }
  0xf2   : > { %8253 = vmatprep.subr.bf16.mxu0 %v9478_v9 }
  0xf8   : > { %7677 = vmatmul.mubr.f32.vlgmr.msra.gmra.mrb[0].mxu0 %v543_v10 }
  0xf9   : > { %8255 = vmatpush3.bf16.msra.mxu0 %v9478_v9  ;;  %7683 = vmatprep.mubr.f32.mxu0 %v533_v7  ;;  %v977_v7 = vand.u32 4294901760, %v968_v4 }
  0xfa   : > { %8281 = vmatprep.subr.bf16.mxu0 %v9478_v9 }
 0x100   : > { %7684 = vmatmul.mubr.f32.vlgmr.msra.gmra.mrb[0].mxu0 %v543_v10  ;;  %v1065_v10 = vsub.f32 %v968_v4, %v977_v7 }
 0x101   : > { %8283 = vmatpush3.bf16.msra.mxu0 %v9478_v9  ;;  %7732 = vmatprep.mubr.f32.mxu0 %v1557_v42 }
 0x102   : > { %8285 = vmatprep.subr.bf16.mxu0 %v9484_v27  ;;  %v1066_v12 = vand.u32 4294901760, %v1065_v10  ;;  %v9594_v20 = vpack.c.bf16 %v1072_v11, %v1065_v10 }
 0x104   : > { %7733 = vmatmul.mubr.f32.vlgmr.msra.gmra.mrb[2].mxu0 %v1567_v43  ;;  %v1067_v14 = vsub.f32 %v1065_v10, %v1066_v12  ;;  %v9608_v30 = vpack.c.bf16 %v1073_v13, %v1066_v12  ;;  %v6309_v13 = vsub.f32 %v9665_v5, %v6308_v0 }
 0x105   : > { %8287 = vmatpush3.bf16.msra.mxu0 %v9484_v27  ;;  %7739 = vmatprep.mubr.f32.mxu0 %v1553_v33 }
 0x106   : > { %8289 = vmatprep.subr.bf16.mxu0 %v9486_v28  ;;  %v1068_v17 = vand.u32 4294901760, %v1067_v14 }
 0x108   : > { %v9588_v19 = vpack.c.bf16 %v1075_v18, %v1068_v17 }
 0x10c   : > { %7740 = vmatmul.mubr.f32.vlgmr.msra.gmra.mrb[2].mxu0 %v1563_v35 }
 0x10d   : > { %8291 = vmatpush3.bf16.msra.mxu0 %v9486_v28  ;;  %7746 = vmatprep.mubr.f32.mxu0 %v1554_v36 }
 0x10e   : > { %8293 = vmatprep.subr.bf16.mxu0 %v9478_v9 }
 0x114   : > { %7747 = vmatmul.mubr.f32.vlgmr.msra.gmra.mrb[2].mxu0 %v1564_v37 }
 0x115   : > { %8295 = vmatpush3.bf16.msra.mxu0 %v9478_v9  ;;  %7753 = vmatprep.mubr.f32.mxu0 %v1555_v38  ;;  %v5303_v38 = vmul.f32 %v9555_v53, %v9555_v53 }
 0x116   : > { %8297 = vmatprep.subr.bf16.mxu0 %v9493_v29 }
 0x117   : > { %v5306_v41 = vand.u32 4294901760, %v5303_v38 }
 0x119   : > { %v5384_v43 = vsub.f32 %v5303_v38, %v5306_v41 }
 0x11b   : > { %v5385_v45 = vand.u32 4294901760, %v5384_v43 }
 0x11c   : > { %7754 = vmatmul.mubr.f32.vlgmr.msra.gmra.mrb[2].mxu0 %v1565_v39  ;;  %v5304_v39 = vmul.f32 %v9559_v54, %v9559_v54 }
 0x11d   : > { %8299 = vmatpush3.bf16.msra.mxu0 %v9493_v29  ;;  %7760 = vmatprep.mubr.f32.mxu0 %v1553_v33  ;;  %v5386_v55 = vsub.f32 %v5384_v43, %v5385_v45 }
 0x11e   : > { %8301 = vmatprep.subr.bf16.mxu0 %v9478_v9  ;;  %v5309_v42 = vand.u32 4294901760, %v5304_v39 }
 0x11f   : > { %v5387_v58 = vand.u32 4294901760, %v5386_v55 }
 0x120   : > { %v5391_v44 = vsub.f32 %v5304_v39, %v5309_v42  ;;  %v8437_v57 = vpack.c.bf16 %v5309_v42, %v5306_v41 }
 0x122   : > { %v5392_v50 = vand.u32 4294901760, %v5391_v44  ;;  %v8443_v61 = vpack.c.bf16 %v5391_v44, %v5384_v43 }
 0x124   : > { %7761 = vmatmul.mubr.f32.vlgmr.msra.gmra.mrb[2].mxu0 %v1563_v35  ;;  %v5393_v56 = vsub.f32 %v5391_v44, %v5392_v50  ;;  %v8449_v2 = vpack.c.bf16 %v5392_v50, %v5385_v45 }
 0x125   : > { %8303 = vmatpush3.bf16.msra.mxu0 %v9478_v9  ;;  %7767 = vmatprep.mubr.f32.mxu0 %v1553_v33  ;;  %v8401_v33 = vpack.c.bf16 %v4386_v25, %v4383_v24 }
 0x126   : > { %8328 = vmatprep.subr.bf16.mxu0 %v9080_v49  ;;  %v5394_v59 = vand.u32 4294901760, %v5393_v56 }
 0x128   : > { %v8440_v60 = vpack.c.bf16 %v5394_v59, %v5387_v58 }
 0x12c   : > { %7768 = vmatmul.mubr.f32.vlgmr.msra.gmra.mrb[2].mxu0 %v1563_v35 }
 0x12d   : > { %8330 = vmatpush3.bf16.msra.mxu0 %v9478_v9  ;;  %7816 = vmatprep.mubr.msk.f32.mxu0 %vm9081_vm1, %v9082_v52 }
 0x12e   : > { %8331 = vmatprep.subr.bf16.mxu0 %v9080_v49 }
 0x130   : > { %7817 = vmatmul.mubr.f32.vlgmr.msra.gmra.mrb[4].mxu0 %v9532_v51 }
 0x131   : > { %8333 = vmatpush3.bf16.msra.mxu0 %v9484_v27  ;;  %7823 = vmatprep.mubr.msk.f32.mxu0 %vm9081_vm1, %v9082_v52  ;;  %v4468_v27 = vsub.f32 %v4381_v22, %v4386_v25  ;;  %v6310_v22 = vand.u32 4294901760, %v6309_v13 }
 0x132   : > { %8334 = vmatprep.subr.bf16.mxu0 %v9080_v49 }
 0x133   : > { %v8407_v37 = vpack.c.bf16 %v4468_v27, %v4461_v26 }
 0x138   : > { %7824 = vmatmul.mubr.f32.vlgmr.msra.gmra.mrb[4].mxu0 %v9518_v46 }
 0x139   : > { %8336 = vmatpush3.bf16.msra.mxu0 %v9486_v28  ;;  %7830 = vmatprep.mubr.msk.f32.mxu0 %vm9081_vm1, %v9082_v52  ;;  %v4462_v28 = vand.u32 4294901760, %v4461_v26 }
 0x13a   : > { %8337 = vmatprep.subr.bf16.mxu0 %v9080_v49 }
 0x13b   : > { %v4463_v31 = vsub.f32 %v4461_v26, %v4462_v28 }
 0x13d   : > { %v4464_v34 = vand.u32 4294901760, %v4463_v31 }
 0x140   : > { %7831 = vmatmul.mubr.f32.vlgmr.msra.gmra.mrb[4].mxu0 %v9523_v47 }
 0x141   : > { %8339 = vmatpush3.bf16.msra.mxu0 %v9478_v9  ;;  %7837 = vmatprep.mubr.msk.f32.mxu0 %vm9081_vm1, %v9082_v52 }
 0x142   : > { %8340 = vmatprep.subr.bf16.mxu0 %v9080_v49 }
 0x148   : > { %7838 = vmatmul.mubr.f32.vlgmr.msra.gmra.mrb[4].mxu0 %v9526_v48 }
 0x149   : > { %8342 = vmatpush3.bf16.msra.mxu0 %v9493_v29  ;;  %7844 = vmatprep.mubr.msk.f32.mxu0 %vm9081_vm1, %v9082_v52  ;;  %v4469_v29 = vand.u32 4294901760, %v4468_v27 }
 0x14a   : > { %8343 = vmatprep.subr.bf16.mxu0 %v9080_v49 }
 0x14b   : > { %v4470_v32 = vsub.f32 %v4468_v27, %v4469_v29  ;;  %v8413_v40 = vpack.c.bf16 %v4469_v29, %v4462_v28 }
 0x14d   : > { %v4471_v35 = vand.u32 4294901760, %v4470_v32 }
 0x14f   : > { %v8404_v36 = vpack.c.bf16 %v4471_v35, %v4464_v34 }
 0x150   : > { %7845 = vmatmul.mubr.f32.vlgmr.msra.gmra.mrb[4].mxu0 %v9518_v46 }
 0x151   : > { %8345 = vmatpush3.bf16.msra.mxu0 %v9478_v9  ;;  %7851 = vmatprep.mubr.msk.f32.mxu0 %vm9081_vm1, %v9082_v52  ;;  %v9579_v9 = vpack.c.bf16 %v980_v8, %v977_v7 }
 0x152   : > { %8364 = vmatprep.subr.bf16.mxu0 %v9080_v49 }
 0x153   : > { %8257 = vmatprep.subr.bf16.mxu1 %v9579_v9 }
 0x154   : > { %8259 = vmatpush3.bf16.msra.mxu1 %v9579_v9 }
 0x155   : > { %8261 = vmatprep.subr.bf16.mxu1 %v9588_v19 }
 0x158   : > { %7852 = vmatmul.mubr.f32.vlgmr.msra.gmra.mrb[4].mxu0 %v9518_v46 }
 0x159   : > { %8366 = vmatpush3.bf16.msra.mxu0 %v8365_v63  ;;  %7900 = vmatprep.mubr.msk.f32.mxu0 %vm9081_vm1, %v9082_v52 }
 0x15a   : > { %8367 = vmatprep.subr.bf16.mxu0 %v9080_v49 }
 0x15c   : > { %7901 = vmatmul.mubr.f32.vlgmr.msra.gmra.mrb[6].mxu0 %v9532_v51 }
 0x15d   : > { %8369 = vmatpush3.bf16.msra.mxu0 %v8368_v6  ;;  %7907 = vmatprep.mubr.msk.f32.mxu0 %vm9081_vm1, %v9082_v52 }
 0x15e   : > { %8370 = vmatprep.subr.bf16.mxu0 %v9080_v49 }
 0x164   : > { %7908 = vmatmul.mubr.f32.vlgmr.msra.gmra.mrb[6].mxu0 %v9518_v46 }
 0x165   : > { %8372 = vmatpush3.bf16.msra.mxu0 %v8371_v16  ;;  %7914 = vmatprep.mubr.msk.f32.mxu0 %vm9081_vm1, %v9082_v52 }
 0x166   : > { %8373 = vmatprep.subr.bf16.mxu0 %v9080_v49 }
 0x16c   : > { %7915 = vmatmul.mubr.f32.vlgmr.msra.gmra.mrb[6].mxu0 %v9523_v47 }
 0x16d   : > { %8375 = vmatpush3.bf16.msra.mxu0 %v8365_v63  ;;  %7921 = vmatprep.mubr.msk.f32.mxu0 %vm9081_vm1, %v9082_v52 }
 0x16e   : > { %8376 = vmatprep.subr.bf16.mxu0 %v9080_v49 }
 0x174   : > { %7922 = vmatmul.mubr.f32.vlgmr.msra.gmra.mrb[6].mxu0 %v9526_v48 }
 0x175   : > { %8378 = vmatpush3.bf16.msra.mxu0 %v8377_v23  ;;  %7928 = vmatprep.mubr.msk.f32.mxu0 %vm9081_vm1, %v9082_v52 }
 0x176   : > { %8379 = vmatprep.subr.bf16.mxu0 %v9080_v49 }
 0x17c   : > { %7929 = vmatmul.mubr.f32.vlgmr.msra.gmra.mrb[6].mxu0 %v9518_v46 }
 0x17d   : > { %8381 = vmatpush3.bf16.msra.mxu0 %v8365_v63  ;;  %7935 = vmatprep.mubr.msk.f32.mxu0 %vm9081_vm1, %v9082_v52  ;;  %v6227_v63 = vmul.f32 %v9559_v54, %v9466_v1 }
 0x17e   : > { %8400 = vmatprep.subr.bf16.mxu0 %v9080_v49 }
 0x17f   : > { %v6232_v4 = vand.u32 4294901760, %v6227_v63 }
 0x181   : > { %v9667_v6 = vsub.f32 %v6227_v63, %v6232_v4  ;;  %v9686_v21 = vpack.c.bf16 %v6232_v4, %v6229_v3 }
 0x183   : > { %v6315_v1 = vand.u32 4294901760, %v9667_v6  ;;  %v8479_v31 = vpack.c.bf16 %v9667_v6, %v9665_v5 }
 0x184   : > { %7936 = vmatmul.mubr.f32.vlgmr.msra.gmra.mrb[6].mxu0 %v9518_v46 }
 0x185   : > { %8402 = vmatpush3.bf16.msra.mxu0 %v8401_v33  ;;  %7984 = vmatprep.mubr.msk.f32.mxu0 %vm9081_vm1, %v9082_v52  ;;  %v6316_v14 = vsub.f32 %v9667_v6, %v6315_v1  ;;  %v8485_v32 = vpack.c.bf16 %v6315_v1, %v6308_v0 }
 0x186   : > { %8403 = vmatprep.subr.bf16.mxu0 %v9080_v49 }
 0x187   : > { %v6317_v23 = vand.u32 4294901760, %v6316_v14 }
 0x188   : > { %7985 = vmatmul.mubr.f32.vlgmr.msra.gmra.mrb[8].mxu0 %v9532_v51 }
 0x189   : > { %8405 = vmatpush3.bf16.msra.mxu0 %v8404_v36  ;;  %7991 = vmatprep.mubr.msk.f32.mxu0 %vm9081_vm1, %v9082_v52  ;;  %v8476_v27 = vpack.c.bf16 %v6317_v23, %v6310_v22 }
 0x18a   : > { %8406 = vmatprep.subr.bf16.mxu0 %v9080_v49 }
 0x190   : > { %7992 = vmatmul.mubr.f32.vlgmr.msra.gmra.mrb[8].mxu0 %v9518_v46 }
 0x191   : > { %8408 = vmatpush3.bf16.msra.mxu0 %v8407_v37  ;;  %7998 = vmatprep.mubr.msk.f32.mxu0 %vm9081_vm1, %v9082_v52 }
 0x192   : > { %8409 = vmatprep.subr.bf16.mxu0 %v9080_v49 }
 0x198   : > { %7999 = vmatmul.mubr.f32.vlgmr.msra.gmra.mrb[8].mxu0 %v9523_v47 }
 0x199   : > { %8411 = vmatpush3.bf16.msra.mxu0 %v8401_v33  ;;  %8005 = vmatprep.mubr.msk.f32.mxu0 %vm9081_vm1, %v9082_v52 }
 0x19a   : > { %8412 = vmatprep.subr.bf16.mxu0 %v9080_v49 }
 0x1a0   : > { %8006 = vmatmul.mubr.f32.vlgmr.msra.gmra.mrb[8].mxu0 %v9526_v48 }
 0x1a1   : > { %8414 = vmatpush3.bf16.msra.mxu0 %v8413_v40  ;;  %8012 = vmatprep.mubr.msk.f32.mxu0 %vm9081_vm1, %v9082_v52 }
 0x1a2   : > { %8415 = vmatprep.subr.bf16.mxu0 %v9080_v49 }
 0x1a8   : > { %8013 = vmatmul.mubr.f32.vlgmr.msra.gmra.mrb[8].mxu0 %v9518_v46 }
 0x1a9   : > { %8417 = vmatpush3.bf16.msra.mxu0 %v8401_v33  ;;  %8019 = vmatprep.mubr.msk.f32.mxu0 %vm9081_vm1, %v9082_v52 }
 0x1aa   : > { %8436 = vmatprep.subr.bf16.mxu0 %v9080_v49 }
 0x1b0   : > { %8020 = vmatmul.mubr.f32.vlgmr.msra.gmra.mrb[8].mxu0 %v9518_v46 }
 0x1b1   : > { %8438 = vmatpush3.bf16.msra.mxu0 %v8437_v57  ;;  %8068 = vmatprep.mubr.msk.f32.mxu0 %vm9081_vm1, %v9082_v52 }
 0x1b2   : > { %8439 = vmatprep.subr.bf16.mxu0 %v9080_v49 }
 0x1b4   : > { %8069 = vmatmul.mubr.f32.vlgmr.msra.gmra.mrb[10].mxu0 %v9532_v51 }
 0x1b5   : > { %8441 = vmatpush3.bf16.msra.mxu0 %v8440_v60  ;;  %8075 = vmatprep.mubr.msk.f32.mxu0 %vm9081_vm1, %v9082_v52 }
 0x1b6   : > { %8442 = vmatprep.subr.bf16.mxu0 %v9080_v49 }
 0x1bc   : > { %8076 = vmatmul.mubr.f32.vlgmr.msra.gmra.mrb[10].mxu0 %v9518_v46 }
 0x1bd   : > { %8444 = vmatpush3.bf16.msra.mxu0 %v8443_v61  ;;  %8082 = vmatprep.mubr.msk.f32.mxu0 %vm9081_vm1, %v9082_v52 }
 0x1be   : > { %8445 = vmatprep.subr.bf16.mxu0 %v9080_v49 }
 0x1c4   : > { %8083 = vmatmul.mubr.f32.vlgmr.msra.gmra.mrb[10].mxu0 %v9523_v47 }
 0x1c5   : > { %8447 = vmatpush3.bf16.msra.mxu0 %v8437_v57  ;;  %8089 = vmatprep.mubr.msk.f32.mxu0 %vm9081_vm1, %v9082_v52 }
 0x1c6   : > { %8448 = vmatprep.subr.bf16.mxu0 %v9080_v49 }
 0x1cc   : > { %8090 = vmatmul.mubr.f32.vlgmr.msra.gmra.mrb[10].mxu0 %v9526_v48 }
 0x1cd   : > { %8450 = vmatpush3.bf16.msra.mxu0 %v8449_v2  ;;  %8096 = vmatprep.mubr.msk.f32.mxu0 %vm9081_vm1, %v9082_v52  ;;  %v2534_v2 = vld [vmem:[%s10038_s21 + $0x8] sm:$0xff] }
 0x1ce   : > { %8451 = vmatprep.subr.bf16.mxu0 %v9080_v49  ;;  %v3004_v4 = vand.u32 4294901760, %v2534_v2 }
 0x1d0   : > { %v3086_v6 = vsub.f32 %v2534_v2, %v3004_v4 }
 0x1d2   : > { %v3087_v1 = vand.u32 4294901760, %v3086_v6 }
 0x1d3   : > { %v7685_v7 = vpop.f32.mrb[0].mxu0 }
 0x1d4   : > { %v974_v8 = vsel %vm459_vm0, %v7685_v7, 0  ;;  %v958_v10 = vpop.f32.mrb[1].mxu0  ;;  %8097 = vmatmul.mubr.f32.vlgmr.msra.gmra.mrb[10].mxu0 %v9518_v46  ;;  %v3088_v13 = vsub.f32 %v3086_v6, %v3087_v1 }
 0x1d5   : > { %v9674_v11 = vand.u32 4294901760, %v974_v8  ;;  %v971_v12 = vsel %vm459_vm0, %v958_v10, 0  ;;  %8453 = vmatpush3.bf16.msra.mxu0 %v8437_v57  ;;  %8103 = vmatprep.mubr.msk.f32.mxu0 %vm9081_vm1, %v9082_v52 }
 0x1d6   : > { %v9681_v15 = vand.u32 4294901760, %v971_v12  ;;  %8472 = vmatprep.subr.bf16.mxu0 %v9080_v49 }
 0x1d7   : > { %v1054_v16 = vsub.f32 %v974_v8, %v9674_v11 }
 0x1d8   : > { %v1044_v17 = vsub.f32 %v971_v12, %v9681_v15 }
 0x1d9   : > { %v1055_v18 = vand.u32 4294901760, %v1054_v16 }
 0x1da   : > { %v1045_v24 = vand.u32 4294901760, %v1044_v17 }
 0x1db   : > { %v1056_v25 = vsub.f32 %v1054_v16, %v1055_v18 }
 0x1dc   : > { %8104 = vmatmul.mubr.f32.vlgmr.msra.gmra.mrb[10].mxu0 %v9518_v46  ;;  %v1046_v26 = vsub.f32 %v1044_v17, %v1045_v24 }
 0x1dd   : > { %8474 = vmatpush3.bf16.msra.mxu0 %v9686_v21  ;;  %8152 = vmatprep.mubr.msk.f32.mxu0 %vm9081_vm1, %v9082_v52  ;;  %v1057_v29 = vand.u32 4294901760, %v1056_v25 }
 0x1de   : > { %v1047_v28 = vand.u32 4294901760, %v1046_v26  ;;  %8475 = vmatprep.subr.bf16.mxu0 %v9080_v49 }
 0x1e0   : > { %7690 = vmatprep.mubr.f32.mxu1 %v1047_v28  ;;  %8153 = vmatmul.mubr.f32.vlgmr.msra.gmra.mrb[12].mxu0 %v9532_v51  ;;  %v1988_v51 = vld [vmem:[%s10037_s7] sm:$0xff] }
 0x1e1   : > { %7691 = vmatmul.mubr.f32.vlgmr.msra.gmra.mrb[0].mxu1 %v1057_v29  ;;  %8477 = vmatpush3.bf16.msra.mxu0 %v8476_v27 }
 0x1e2   : > { %8263 = vmatpush3.bf16.msra.mxu1 %v9588_v19  ;;  %7697 = vmatprep.mubr.f32.mxu1 %v9681_v15  ;;  %v1989_v19 = vld [vmem:[%s10037_s7 + $0x8] sm:$0xff] }
 0x1e3   : > { %8159 = vmatprep.mubr.msk.f32.mxu0 %vm9081_vm1, %v9082_v52  ;;  %8265 = vmatprep.subr.bf16.mxu1 %v9594_v20 }
 0x1e4   : > { %8478 = vmatprep.subr.bf16.mxu0 %v9080_v49 }
 0x1e8   : > { %8160 = vmatmul.mubr.f32.vlgmr.msra.gmra.mrb[12].mxu0 %v9518_v46 }
 0x1e9   : > { %7698 = vmatmul.mubr.f32.vlgmr.msra.gmra.mrb[0].mxu1 %v9674_v11  ;;  %8480 = vmatpush3.bf16.msra.mxu0 %v8479_v31 }
 0x1ea   : > { %8267 = vmatpush3.bf16.msra.mxu1 %v9594_v20  ;;  %7704 = vmatprep.mubr.f32.mxu1 %v1044_v17  ;;  %v2000_v20 = vand.u32 4294901760, %v1989_v19 }
 0x1eb   : > { %8166 = vmatprep.mubr.msk.f32.mxu0 %vm9081_vm1, %v9082_v52  ;;  %8269 = vmatprep.subr.bf16.mxu1 %v9579_v9 }
 0x1ec   : > { %8481 = vmatprep.subr.bf16.mxu0 %v9080_v49  ;;  %v2092_v34 = vsub.f32 %v1989_v19, %v2000_v20 }
 0x1ee   : > { %v2093_v36 = vand.u32 4294901760, %v2092_v34 }
 0x1f0   : > { %8167 = vmatmul.mubr.f32.vlgmr.msra.gmra.mrb[12].mxu0 %v9523_v47  ;;  %v1997_v47 = vand.u32 4294901760, %v1988_v51  ;;  %v2094_v40 = vsub.f32 %v2092_v34, %v2093_v36 }
 0x1f1   : > { %7705 = vmatmul.mubr.f32.vlgmr.msra.gmra.mrb[0].mxu1 %v1054_v16  ;;  %8483 = vmatpush3.bf16.msra.mxu0 %v9686_v21 }
 0x1f2   : > { %8271 = vmatpush3.bf16.msra.mxu1 %v9579_v9  ;;  %7711 = vmatprep.mubr.f32.mxu1 %v1045_v24  ;;  %v2085_v33 = vsub.f32 %v1988_v51, %v1997_v47  ;;  %v8304_v38 = vpack.c.bf16 %v2000_v20, %v1997_v47  ;;  %v2095_v50 = vand.u32 4294901760, %v2094_v40 }
 0x1f3   : > { %8173 = vmatprep.mubr.msk.f32.mxu0 %vm9081_vm1, %v9082_v52  ;;  %8273 = vmatprep.subr.bf16.mxu1 %v9608_v30 }
 0x1f4   : > { %8484 = vmatprep.subr.bf16.mxu0 %v9080_v49  ;;  %v2086_v35 = vand.u32 4294901760, %v2085_v33  ;;  %v8312_v62 = vpack.c.bf16 %v2092_v34, %v2085_v33 }
 0x1f6   : > { %v2087_v39 = vsub.f32 %v2085_v33, %v2086_v35  ;;  %v8320_v63 = vpack.c.bf16 %v2093_v36, %v2086_v35 }
 0x1f8   : > { %8174 = vmatmul.mubr.f32.vlgmr.msra.gmra.mrb[12].mxu0 %v9526_v48  ;;  %v2088_v45 = vand.u32 4294901760, %v2087_v39 }
 0x1f9   : > { %7712 = vmatmul.mubr.f32.vlgmr.msra.gmra.mrb[0].mxu1 %v1055_v18  ;;  %8486 = vmatpush3.bf16.msra.mxu0 %v8485_v32  ;;  %v3089_v18 = vand.u32 4294901760, %v3088_v13 }
 0x1fa   : > { %8275 = vmatpush3.bf16.msra.mxu1 %v9608_v30  ;;  %7718 = vmatprep.mubr.f32.mxu1 %v9681_v15  ;;  %v8308_v59 = vpack.c.bf16 %v2095_v50, %v2088_v45 }
 0x1fb   : > { %8180 = vmatprep.mubr.msk.f32.mxu0 %vm9081_vm1, %v9082_v52  ;;  %8277 = vmatprep.subr.bf16.mxu1 %v9579_v9 }
 0x1fc   : > { %8487 = vmatprep.subr.bf16.mxu0 %v9080_v49 }
 0x1ff   : > { %v7769_v37 = vpop.f32.mrb[2].mxu0 }
 0x200   : > { %v1994_v48 = vsel %vm459_vm0, %v7769_v37, 0  ;;  %v1978_v41 = vpop.f32.mrb[3].mxu0  ;;  %8181 = vmatmul.mubr.f32.vlgmr.msra.gmra.mrb[12].mxu0 %v9518_v46 }
 0x201   : > { %v9731_v30 = vand.u32 4294901760, %v1994_v48  ;;  %v1991_v42 = vsel %vm459_vm0, %v1978_v41, 0  ;;  %7719 = vmatmul.mubr.f32.vlgmr.msra.gmra.mrb[0].mxu1 %v9674_v11  ;;  %8489 = vmatpush3.bf16.msra.mxu0 %v9686_v21 }
 0x202   : > { %v2063_v43 = vand.u32 4294901760, %v1991_v42  ;;  %8279 = vmatpush3.bf16.msra.mxu1 %v9579_v9  ;;  %7725 = vmatprep.mubr.f32.mxu1 %v9681_v15 }
 0x203   : > { %v2074_v44 = vsub.f32 %v1994_v48, %v9731_v30  ;;  %8187 = vmatprep.mubr.msk.f32.mxu0 %vm9081_vm1, %v9082_v52  ;;  %8305 = vmatprep.subr.bf16.mxu1 %v8304_v38 }
 0x204   : > { %v2064_v55 = vsub.f32 %v1991_v42, %v2063_v43 }
 0x205   : > { %v2075_v56 = vand.u32 4294901760, %v2074_v44 }
 0x206   : > { %v2065_v57 = vand.u32 4294901760, %v2064_v55 }
 0x207   : > { %v2076_v58 = vsub.f32 %v2074_v44, %v2075_v56 }
 0x208   : > { %8188 = vmatmul.mubr.f32.vlgmr.msra.gmra.mrb[12].mxu0 %v9518_v46  ;;  %v2066_v60 = vsub.f32 %v2064_v55, %v2065_v57  ;;  %v2533_v46 = vld [vmem:[%s10038_s21] sm:$0xff] }
 0x209   : > { %7726 = vmatmul.mubr.f32.vlgmr.msra.gmra.mrb[0].mxu1 %v9674_v11  ;;  %v2077_v61 = vand.u32 4294901760, %v2076_v58  ;;  %v3001_v3 = vand.u32 4294901760, %v2533_v46 }
 0x20a   : > { %8307 = vmatpush3.bf16.msra.mxu1 %v8304_v38  ;;  %v2067_v9 = vand.u32 4294901760, %v2066_v60 }
 0x20b   : > { %8309 = vmatprep.subr.bf16.mxu1 %v8308_v59  ;;  %v3079_v5 = vsub.f32 %v2533_v46, %v3001_v3  ;;  %v9753_v16 = vpack.c.bf16 %v3004_v4, %v3001_v3 }
 0x20c   : > { %7774 = vmatprep.mubr.f32.mxu1 %v2067_v9 }
 0x20d   : > { %7775 = vmatmul.mubr.f32.vlgmr.msra.gmra.mrb[2].mxu1 %v2077_v61  ;;  %v3080_v0 = vand.u32 4294901760, %v3079_v5  ;;  %v9766_v24 = vpack.c.bf16 %v3086_v6, %v3079_v5 }
 0x20e   : > { %8311 = vmatpush3.bf16.msra.mxu1 %v8308_v59  ;;  %7781 = vmatprep.mubr.f32.mxu1 %v2063_v43 }
 0x20f   : > { %8313 = vmatprep.subr.bf16.mxu1 %v8312_v62  ;;  %v3081_v12 = vsub.f32 %v3079_v5, %v3080_v0  ;;  %v9776_v25 = vpack.c.bf16 %v3087_v1, %v3080_v0 }
 0x211   : > { %v3082_v17 = vand.u32 4294901760, %v3081_v12 }
 0x213   : > { %v9759_v22 = vpack.c.bf16 %v3089_v18, %v3082_v17 }
 0x215   : > { %7782 = vmatmul.mubr.f32.vlgmr.msra.gmra.mrb[2].mxu1 %v9731_v30 }
 0x216   : > { %8315 = vmatpush3.bf16.msra.mxu1 %v8312_v62  ;;  %7788 = vmatprep.mubr.f32.mxu1 %v2064_v55 }
 0x217   : > { %8317 = vmatprep.subr.bf16.mxu1 %v8304_v38 }
 0x21d   : > { %7789 = vmatmul.mubr.f32.vlgmr.msra.gmra.mrb[2].mxu1 %v2074_v44 }
 0x21e   : > { %8319 = vmatpush3.bf16.msra.mxu1 %v8304_v38  ;;  %7795 = vmatprep.mubr.f32.mxu1 %v2065_v57 }
 0x21f   : > { %8321 = vmatprep.subr.bf16.mxu1 %v8320_v63 }
 0x225   : > { %7796 = vmatmul.mubr.f32.vlgmr.msra.gmra.mrb[2].mxu1 %v2075_v56 }
 0x226   : > { %8323 = vmatpush3.bf16.msra.mxu1 %v8320_v63  ;;  %7802 = vmatprep.mubr.f32.mxu1 %v2063_v43 }
 0x227   : > { %8325 = vmatprep.subr.bf16.mxu1 %v8304_v38 }
 0x22b   : > { %v2993_v7 = vpop.f32.mrb[4].mxu0 }
 0x22c   : > { %v2998_v8 = vsel %vm459_vm0, %v2993_v7, 0  ;;  %v7853_v10 = vpop.f32.mrb[5].mxu0 }
 0x22d   : > { %v3067_v11 = vand.u32 4294901760, %v2998_v8  ;;  %7803 = vmatmul.mubr.f32.vlgmr.msra.gmra.mrb[2].mxu1 %v9731_v30 }
 0x22e   : > { %8327 = vmatpush3.bf16.msra.mxu1 %v8304_v38  ;;  %7809 = vmatprep.mubr.f32.mxu1 %v2063_v43 }
 0x22f   : > { %v3068_v14 = vsub.f32 %v2998_v8, %v3067_v11  ;;  %8346 = vmatprep.subr.bf16.mxu1 %v9080_v49 }
 0x231   : > { %v3069_v15 = vand.u32 4294901760, %v3068_v14 }
 0x233   : > { %v3070_v21 = vsub.f32 %v3068_v14, %v3069_v15 }
 0x235   : > { %7810 = vmatmul.mubr.f32.vlgmr.msra.gmra.mrb[2].mxu1 %v9731_v30  ;;  %v3071_v23 = vand.u32 4294901760, %v3070_v21 }
 0x236   : > { %8348 = vmatpush3.bf16.msra.mxu1 %v9753_v16  ;;  %7858 = vmatprep.mubr.msk.f32.mxu1 %vm9081_vm1, %v9082_v52 }
 0x237   : > { %8349 = vmatprep.subr.bf16.mxu1 %v9080_v49 }
 0x239   : > { %7859 = vmatmul.mubr.f32.vlgmr.msra.gmra.mrb[4].mxu1 %v3071_v23 }
 0x23a   : > { %8351 = vmatpush3.bf16.msra.mxu1 %v9759_v22  ;;  %7865 = vmatprep.mubr.msk.f32.mxu1 %vm9081_vm1, %v9082_v52 }
 0x23b   : > { %8352 = vmatprep.subr.bf16.mxu1 %v9080_v49 }
 0x241   : > { %7866 = vmatmul.mubr.f32.vlgmr.msra.gmra.mrb[4].mxu1 %v3067_v11 }
 0x242   : > { %8354 = vmatpush3.bf16.msra.mxu1 %v9766_v24  ;;  %7872 = vmatprep.mubr.msk.f32.mxu1 %vm9081_vm1, %v9082_v52 }
 0x243   : > { %8355 = vmatprep.subr.bf16.mxu1 %v9080_v49 }
 0x249   : > { %7873 = vmatmul.mubr.f32.vlgmr.msra.gmra.mrb[4].mxu1 %v3068_v14 }
 0x24a   : > { %8357 = vmatpush3.bf16.msra.mxu1 %v9753_v16  ;;  %7879 = vmatprep.mubr.msk.f32.mxu1 %vm9081_vm1, %v9082_v52 }
 0x24b   : > { %8358 = vmatprep.subr.bf16.mxu1 %v9080_v49 }
 0x251   : > { %7880 = vmatmul.mubr.f32.vlgmr.msra.gmra.mrb[4].mxu1 %v3069_v15  ;;  %v8800_v15 = vld [vmem:[%s9439_s28] sm:$0xff] }
 0x252   : > { %8360 = vmatpush3.bf16.msra.mxu1 %v9776_v25  ;;  %7886 = vmatprep.mubr.msk.f32.mxu1 %vm9081_vm1, %v9082_v52 }
 0x253   : > { %8361 = vmatprep.subr.bf16.mxu1 %v9080_v49 }
 0x257   : > { %v3914_v26 = vpop.f32.mrb[6].mxu0 }
 0x258   : > { %v3919_v27 = vsel %vm459_vm0, %v3914_v26, 0  ;;  %v7937_v28 = vpop.f32.mrb[7].mxu0 }
 0x259   : > { %v3988_v29 = vand.u32 4294901760, %v3919_v27  ;;  %7887 = vmatmul.mubr.f32.vlgmr.msra.gmra.mrb[4].mxu1 %v3067_v11 }
 0x25a   : > { %8363 = vmatpush3.bf16.msra.mxu1 %v9753_v16  ;;  %7893 = vmatprep.mubr.msk.f32.mxu1 %vm9081_vm1, %v9082_v52 }
 0x25b   : > { %v3989_v31 = vsub.f32 %v3919_v27, %v3988_v29  ;;  %8382 = vmatprep.subr.bf16.mxu1 %v9080_v49 }
 0x25d   : > { %v3990_v51 = vand.u32 4294901760, %v3989_v31 }
 0x25f   : > { %v3991_v19 = vsub.f32 %v3989_v31, %v3990_v51 }
 0x261   : > { %7894 = vmatmul.mubr.f32.vlgmr.msra.gmra.mrb[4].mxu1 %v3067_v11  ;;  %v3992_v47 = vand.u32 4294901760, %v3991_v19 }
 0x262   : > { %8384 = vmatpush3.bf16.msra.mxu1 %v9753_v16  ;;  %7942 = vmatprep.mubr.msk.f32.mxu1 %vm9081_vm1, %v9082_v52 }
 0x263   : > { %8385 = vmatprep.subr.bf16.mxu1 %v9080_v49 }
 0x265   : > { %7943 = vmatmul.mubr.f32.vlgmr.msra.gmra.mrb[6].mxu1 %v3992_v47 }
 0x266   : > { %8387 = vmatpush3.bf16.msra.mxu1 %v9759_v22  ;;  %7949 = vmatprep.mubr.msk.f32.mxu1 %vm9081_vm1, %v9082_v52 }
 0x267   : > { %8388 = vmatprep.subr.bf16.mxu1 %v9080_v49 }
 0x26d   : > { %7950 = vmatmul.mubr.f32.vlgmr.msra.gmra.mrb[6].mxu1 %v3988_v29 }
 0x26e   : > { %8390 = vmatpush3.bf16.msra.mxu1 %v9766_v24  ;;  %7956 = vmatprep.mubr.msk.f32.mxu1 %vm9081_vm1, %v9082_v52 }
 0x26f   : > { %8391 = vmatprep.subr.bf16.mxu1 %v9080_v49 }
 0x275   : > { %7957 = vmatmul.mubr.f32.vlgmr.msra.gmra.mrb[6].mxu1 %v3989_v31 }
 0x276   : > { %8393 = vmatpush3.bf16.msra.mxu1 %v9753_v16  ;;  %7963 = vmatprep.mubr.msk.f32.mxu1 %vm9081_vm1, %v9082_v52 }
 0x277   : > { %8394 = vmatprep.subr.bf16.mxu1 %v9080_v49 }
 0x27d   : > { %7964 = vmatmul.mubr.f32.vlgmr.msra.gmra.mrb[6].mxu1 %v3990_v51 }
 0x27e   : > { %8396 = vmatpush3.bf16.msra.mxu1 %v9776_v25  ;;  %7970 = vmatprep.mubr.msk.f32.mxu1 %vm9081_vm1, %v9082_v52 }
 0x27f   : > { %8397 = vmatprep.subr.bf16.mxu1 %v9080_v49 }
 0x283   : > { %v4837_v20 = vpop.f32.mrb[8].mxu0 }
 0x284   : > { %v4842_v32 = vsel %vm459_vm0, %v4837_v20, 0  ;;  %v8021_v33 = vpop.f32.mrb[9].mxu0 }
 0x285   : > { %v4911_v34 = vand.u32 4294901760, %v4842_v32  ;;  %7971 = vmatmul.mubr.f32.vlgmr.msra.gmra.mrb[6].mxu1 %v3988_v29 }
 0x286   : > { %8399 = vmatpush3.bf16.msra.mxu1 %v9753_v16  ;;  %7977 = vmatprep.mubr.msk.f32.mxu1 %vm9081_vm1, %v9082_v52 }
 0x287   : > { %v4912_v35 = vsub.f32 %v4842_v32, %v4911_v34  ;;  %8418 = vmatprep.subr.bf16.mxu1 %v9080_v49 }
 0x289   : > { %v4913_v36 = vand.u32 4294901760, %v4912_v35 }
 0x28b   : > { %v4914_v37 = vsub.f32 %v4912_v35, %v4913_v36 }
 0x28d   : > { %7978 = vmatmul.mubr.f32.vlgmr.msra.gmra.mrb[6].mxu1 %v3988_v29  ;;  %v4915_v38 = vand.u32 4294901760, %v4914_v37 }
 0x28e   : > { %8420 = vmatpush3.bf16.msra.mxu1 %v9753_v16  ;;  %8026 = vmatprep.mubr.msk.f32.mxu1 %vm9081_vm1, %v9082_v52 }
 0x28f   : > { %8421 = vmatprep.subr.bf16.mxu1 %v9080_v49 }
 0x291   : > { %8027 = vmatmul.mubr.f32.vlgmr.msra.gmra.mrb[8].mxu1 %v4915_v38 }
 0x292   : > { %8423 = vmatpush3.bf16.msra.mxu1 %v9759_v22  ;;  %8033 = vmatprep.mubr.msk.f32.mxu1 %vm9081_vm1, %v9082_v52 }
 0x293   : > { %8424 = vmatprep.subr.bf16.mxu1 %v9080_v49 }
 0x299   : > { %8034 = vmatmul.mubr.f32.vlgmr.msra.gmra.mrb[8].mxu1 %v4911_v34 }
 0x29a   : > { %8426 = vmatpush3.bf16.msra.mxu1 %v9766_v24  ;;  %8040 = vmatprep.mubr.msk.f32.mxu1 %vm9081_vm1, %v9082_v52 }
 0x29b   : > { %8427 = vmatprep.subr.bf16.mxu1 %v9080_v49 }
 0x2a1   : > { %8041 = vmatmul.mubr.f32.vlgmr.msra.gmra.mrb[8].mxu1 %v4912_v35 }
 0x2a2   : > { %8429 = vmatpush3.bf16.msra.mxu1 %v9753_v16  ;;  %8047 = vmatprep.mubr.msk.f32.mxu1 %vm9081_vm1, %v9082_v52 }
 0x2a3   : > { %8430 = vmatprep.subr.bf16.mxu1 %v9080_v49 }
 0x2a9   : > { %8048 = vmatmul.mubr.f32.vlgmr.msra.gmra.mrb[8].mxu1 %v4913_v36 }
 0x2aa   : > { %8432 = vmatpush3.bf16.msra.mxu1 %v9776_v25  ;;  %8054 = vmatprep.mubr.msk.f32.mxu1 %vm9081_vm1, %v9082_v52 }
 0x2ab   : > { %8433 = vmatprep.subr.bf16.mxu1 %v9080_v49 }
 0x2af   : > { %v5760_v39 = vpop.f32.mrb[10].mxu0 }
 0x2b0   : > { %v5765_v40 = vsel %vm459_vm0, %v5760_v39, 0  ;;  %v8105_v48 = vpop.f32.mrb[11].mxu0 }
 0x2b1   : > { %v5834_v41 = vand.u32 4294901760, %v5765_v40  ;;  %8055 = vmatmul.mubr.f32.vlgmr.msra.gmra.mrb[8].mxu1 %v4911_v34 }
 0x2b2   : > { %8435 = vmatpush3.bf16.msra.mxu1 %v9753_v16  ;;  %8061 = vmatprep.mubr.msk.f32.mxu1 %vm9081_vm1, %v9082_v52 }
 0x2b3   : > { %v5835_v30 = vsub.f32 %v5765_v40, %v5834_v41  ;;  %8454 = vmatprep.subr.bf16.mxu1 %v9080_v49 }
 0x2b5   : > { %v5836_v42 = vand.u32 4294901760, %v5835_v30 }
 0x2b7   : > { %v5837_v43 = vsub.f32 %v5835_v30, %v5836_v42 }
 0x2b9   : > { %8062 = vmatmul.mubr.f32.vlgmr.msra.gmra.mrb[8].mxu1 %v4911_v34  ;;  %v5838_v44 = vand.u32 4294901760, %v5837_v43 }
 0x2ba   : > { %8456 = vmatpush3.bf16.msra.mxu1 %v9753_v16  ;;  %8110 = vmatprep.mubr.msk.f32.mxu1 %vm9081_vm1, %v9082_v52 }
 0x2bb   : > { %8457 = vmatprep.subr.bf16.mxu1 %v9080_v49 }
 0x2bd   : > { %8111 = vmatmul.mubr.f32.vlgmr.msra.gmra.mrb[10].mxu1 %v5838_v44 }
 0x2be   : > { %8459 = vmatpush3.bf16.msra.mxu1 %v9759_v22  ;;  %8117 = vmatprep.mubr.msk.f32.mxu1 %vm9081_vm1, %v9082_v52 }
 0x2bf   : > { %8460 = vmatprep.subr.bf16.mxu1 %v9080_v49 }
 0x2c5   : > { %8118 = vmatmul.mubr.f32.vlgmr.msra.gmra.mrb[10].mxu1 %v5834_v41 }
 0x2c6   : > { %8462 = vmatpush3.bf16.msra.mxu1 %v9766_v24  ;;  %8124 = vmatprep.mubr.msk.f32.mxu1 %vm9081_vm1, %v9082_v52 }
 0x2c7   : > { %8463 = vmatprep.subr.bf16.mxu1 %v9080_v49 }
 0x2cd   : > { %8125 = vmatmul.mubr.f32.vlgmr.msra.gmra.mrb[10].mxu1 %v5835_v30 }
 0x2ce   : > { %8465 = vmatpush3.bf16.msra.mxu1 %v9753_v16  ;;  %8131 = vmatprep.mubr.msk.f32.mxu1 %vm9081_vm1, %v9082_v52 }
 0x2cf   : > { %8466 = vmatprep.subr.bf16.mxu1 %v9080_v49 }
 0x2d5   : > { %8132 = vmatmul.mubr.f32.vlgmr.msra.gmra.mrb[10].mxu1 %v5836_v42 }
 0x2d6   : > { %8468 = vmatpush3.bf16.msra.mxu1 %v9776_v25  ;;  %8138 = vmatprep.mubr.msk.f32.mxu1 %vm9081_vm1, %v9082_v52 }
 0x2d7   : > { %8469 = vmatprep.subr.bf16.mxu1 %v9080_v49 }
 0x2db   : > { %v6683_v45 = vpop.f32.mrb[12].mxu0 }
 0x2dc   : > { %v6688_v50 = vsel %vm459_vm0, %v6683_v45, 0  ;;  %v7727_v55 = vpop.f32.mrb[0].mxu1  ;;  %v8189_v56 = vpop.f32.mrb[13].mxu0 }
 0x2dd   : > { %v6757_v57 = vand.u32 4294901760, %v6688_v50  ;;  %v1468_v58 = vpop.f32.mrb[1].mxu1  ;;  %8139 = vmatmul.mubr.f32.vlgmr.msra.gmra.mrb[10].mxu1 %v5834_v41  ;;  %v2499_v63 = vand.u32 2147483647, %v7727_v55 }
 0x2de   : > { %8471 = vmatpush3.bf16.msra.mxu1 %v9753_v16  ;;  %8145 = vmatprep.mubr.msk.f32.mxu1 %vm9081_vm1, %v9082_v52  ;;  %v2498_v3 = vand.u32 2147483647, %v1468_v58 }
 0x2df   : > { %v6758_v59 = vsub.f32 %v6688_v50, %v6757_v57  ;;  %8490 = vmatprep.subr.bf16.mxu1 %v9080_v49 }
 0x2e1   : > { %v6759_v60 = vand.u32 4294901760, %v6758_v59 }
 0x2e3   : > { %v6760_v9 = vsub.f32 %v6758_v59, %v6759_v60 }
 0x2e5   : > { %8146 = vmatmul.mubr.f32.vlgmr.msra.gmra.mrb[10].mxu1 %v5834_v41  ;;  %v6761_v61 = vand.u32 4294901760, %v6760_v9 }
 0x2e6   : > { %8492 = vmatpush3.bf16.msra.mxu1 %v9753_v16  ;;  %8194 = vmatprep.mubr.msk.f32.mxu1 %vm9081_vm1, %v9082_v52 }
 0x2e7   : > { %8493 = vmatprep.subr.bf16.mxu1 %v9080_v49 }
 0x2e9   : > { %8195 = vmatmul.mubr.f32.vlgmr.msra.gmra.mrb[12].mxu1 %v6761_v61 }
 0x2ea   : > { %8495 = vmatpush3.bf16.msra.mxu1 %v9759_v22  ;;  %8201 = vmatprep.mubr.msk.f32.mxu1 %vm9081_vm1, %v9082_v52 }
 0x2eb   : > { %8496 = vmatprep.subr.bf16.mxu1 %v9080_v49 }
 0x2f1   : > { %8202 = vmatmul.mubr.f32.vlgmr.msra.gmra.mrb[12].mxu1 %v6757_v57 }
 0x2f2   : > { %8498 = vmatpush3.bf16.msra.mxu1 %v9766_v24  ;;  %8208 = vmatprep.mubr.msk.f32.mxu1 %vm9081_vm1, %v9082_v52 }
 0x2f3   : > { %8499 = vmatprep.subr.bf16.mxu1 %v9080_v49 }
 0x2f9   : > { %8209 = vmatmul.mubr.f32.vlgmr.msra.gmra.mrb[12].mxu1 %v6758_v59 }
 0x2fa   : > { %8501 = vmatpush3.bf16.msra.mxu1 %v9753_v16  ;;  %8215 = vmatprep.mubr.msk.f32.mxu1 %vm9081_vm1, %v9082_v52 }
 0x2fb   : > { %8502 = vmatprep.subr.bf16.mxu1 %v9080_v49 }
 0x301   : > { %8216 = vmatmul.mubr.f32.vlgmr.msra.gmra.mrb[12].mxu1 %v6759_v60 }
 0x302   : > { %8504 = vmatpush3.bf16.msra.mxu1 %v9776_v25  ;;  %8222 = vmatprep.mubr.msk.f32.mxu1 %vm9081_vm1, %v9082_v52 }
 0x303   : > { %8505 = vmatprep.subr.bf16.mxu1 %v9080_v49 }
 0x308   : > { %v7811_v62 = vpop.f32.mrb[2].mxu1 }
 0x309   : > { %v2501_v46 = vand.u32 2147483647, %v7811_v62  ;;  %v2488_v2 = vpop.f32.mrb[3].mxu1  ;;  %8223 = vmatmul.mubr.f32.vlgmr.msra.gmra.mrb[12].mxu1 %v6757_v57 }
 0x30a   : > { %v2500_v4 = vand.u32 2147483647, %v2488_v2  ;;  %8507 = vmatpush3.bf16.msra.mxu1 %v9753_v16  ;;  %8229 = vmatprep.mubr.msk.f32.mxu1 %vm9081_vm1, %v9082_v52  ;;  %v2516_v52 = vsub.f32 %v9555_v53, %v8800_v15  ;;  %v8801_v16 = vld [vmem:[%s9439_s28 + $0x8] sm:$0xff]  ;;  %s7363_s28 = sshll.u32 %s10039_s20, 1  ;;  %s7193_s20 = scalar_lea.sflag [#allocation4], %s9435_s26 }
 0x30b   : > { %v2503_v5 = vadd.f32 %v2501_v46, %v2499_v63  ;;  %v2517_v17 = vsub.f32 %v9559_v54, %v8801_v16  ;;  %s451_s0 = sadd.s32 1, %s7363_s28  ;;  %s450_s24 = sld [smem:[#allocation2 + %s7363_s28]] }
 0x30c   : > { %v2502_v6 = vadd.f32 %v2500_v4, %v2498_v3  ;;  %v2518_v21 = vand.u32 2147483647, %v2516_v52  ;;  %s452_s30 = sld [smem:[#allocation2 + %s451_s0]] }
 0x30d   : > { %v2505_v0 = vsel %vm459_vm0, %v2503_v5, 0.0  ;;  %v2519_v22 = vand.u32 2147483647, %v2517_v17 }
 0x30e   : > { %v2504_v49 = vsel %vm459_vm0, %v2502_v6, 0.0  ;;  %v2520_v23 = vsel %vm459_vm0, %v2518_v21, 0.0 }
 0x30f   : > { %v2506_v1 = vadd.f32 %v2505_v0, %v2504_v49  ;;  %v2521_v24 = vsel %vm459_vm0, %v2519_v22, 0.0  ;;  %v7180_v0 = vlaneseq }
 0x310   : > { %v2522_v25 = vadd.f32 %v2521_v24, %v2520_v23 }
 0x311   : > { %8230 = vmatmul.mubr.f32.vlgmr.msra.gmra.mrb[12].mxu1 %v6757_v57  ;;  %2507 = vadd.xlane.f32.xlu0 %v2506_v1  ;;  %v7161_v34 = vstv %s450_s24  ;;  %v7181_v49 = vand.u32 127, %v7180_v0  ;;  %s10042_s24 = sld [smem:[#allocation32_spill]] }
 0x312   : > { %v7156_v35 = vstv %s452_s30 }
 0x313   : > { %vm7184_vm3 = vcmp.eq.s32.totalorder %v7181_v49, 2  ;;  %vm7183_vm4 = vcmp.eq.s32.totalorder %v7181_v49, 1  ;;  %vm7182_vm5 = vcmp.eq.s32.totalorder %v7181_v49, 0 }
 0x315   : > { %2523 = vadd.xlane.f32.xlu0 %v2522_v25 }
 0x317   : > { %s9900_s30 = scalar_lea.hbm %s10042_s24, %s7364_s29 }
 0x334   : > { %v3455_v7 = vpop.f32.mrb[4].mxu1 }
 0x335   : > { %v7895_v8 = vpop.f32.mrb[5].mxu1  ;;  %v7149_v11 = vmul.f32 %v3455_v7, %v3455_v7 }
 0x360   : > { %v4376_v10 = vpop.f32.mrb[6].mxu1 }
 0x361   : > { %v7150_v12 = vmul.f32 %v4376_v10, %v4376_v10  ;;  %v7151_v13 = vmul.f32 %v4376_v10, %v3455_v7  ;;  %v7979_v14 = vpop.f32.mrb[7].mxu1 }
 0x363   : > { %v7164_v18 = vadd.f32 %v7150_v12, %v7149_v11  ;;  %v7160_v48 = vmul.f32 2.0, %v7151_v13 }
 0x365   : > { %v7165_v37 = vadd.f32 %v7164_v18, %v7161_v34  ;;  %v7162_v44 = vadd.f32 %v7161_v34, %v7160_v48 }
 0x38c   : > { %v5299_v26 = vpop.f32.mrb[8].mxu1 }
 0x38d   : > { %v7152_v27 = vsub.f32 %v5299_v26, %v7149_v11  ;;  %v8063_v28 = vpop.f32.mrb[9].mxu1 }
 0x39e   : > { %v2508_v29 = vpop.xlane.xlu0 %2507 }
 0x39f   : > { %v2509_v31 = vrot.slane %v2508_v29, 4 }
 0x3a1   : > { %v2510_v51 = vadd.f32 %v2509_v31, %v2508_v29 }
 0x3a2   : > { %v2524_v57 = vpop.xlane.xlu0 %2523 }
 0x3a3   : > { %v2511_v53 = vrot.slane %v2510_v51, 2  ;;  %v2525_v58 = vrot.slane %v2524_v57, 4 }
 0x3a5   : > { %v2512_v19 = vadd.f32 %v2511_v53, %v2510_v51  ;;  %v2526_v59 = vadd.f32 %v2525_v58, %v2524_v57 }
 0x3a7   : > { %v2513_v47 = vrot.slane %v2512_v19, 1  ;;  %v2527_v60 = vrot.slane %v2526_v59, 2 }
 0x3a9   : > { %v2514_v54 = vadd.f32 %v2513_v47, %v2512_v19  ;;  %v2528_v9 = vadd.f32 %v2527_v60, %v2526_v59 }
 0x3ab   : > { %8648 = vpush %v2514_v54  ;;  %v2529_v61 = vrot.slane %v2528_v9, 1 }
 0x3ad   : > { %v2530_v62 = vadd.f32 %v2529_v61, %v2528_v9 }
 0x3af   : > { %8650 = vpush %v2530_v62 }
 0x3b8   : > { %v6222_v20 = vpop.f32.mrb[10].mxu1 }
 0x3b9   : > { %v7153_v32 = vsub.f32 %v6222_v20, %v7150_v12  ;;  %v8147_v33 = vpop.f32.mrb[11].mxu1 }
 0x3bb   : > { %v7158_v36 = vadd.f32 %v7153_v32, %v7152_v27 }
 0x3bd   : > { %v7159_v38 = vadd.f32 %v7158_v36, %v7156_v35 }
 0x3bf   : > { %v7166_v39 = vmul.f32 %v7165_v37, %v7159_v38 }
 0x3c1   : > { %8798 = vrcp.f32 %v7166_v39 }
 0x3cb   : > { %v8799_v50 = vpop.eup %8798 }
 0x3dc   : > { %s8649_s6 = spop %8648 }
 0x3dd   : > { %v7189_v10 = vstv %s8649_s6  ;;  %s8937_s6 = sshll.u32 %s9083_s16, 4  ;;  %s8938_s6 = int_to_ptr.vmem [resolvable:$false] %s8937_s6 }
 0x3de   : > { %p8940_p9 = scmp.lt.s32.totalorder %s9902_s22, %s8938_s6 }
 0x3e0   : > { %s8651_s27 = spop %8650 }
 0x3e1   : > { %v7185_v1 = vstv %s8651_s27  ;;  %s8939_s27 = scalar_lea.vmem %s8938_s6, 32 }
 0x3e2   : > { %v7186_v7 = vsel %vm7184_vm3, %v7185_v1, 0.0  ;;  %p8941_p1 = scmp.lt.s32.totalorder %s8939_s27, %s8933_s9 }
 0x3e4   : > { %v7145_v40 = vpop.f32.mrb[12].mxu1  ;;  %p8942_p4 = por %p8941_p1, %p8940_p9 }
 0x3e5   : > { %v7154_v41 = vsub.f32 %v7145_v40, %v7151_v13  ;;  %v8231_v30 = vpop.f32.mrb[13].mxu1 }
 0x3e6   : > { %p8943_p10 = pnand %p8942_p4, %p8936_p7 }
 0x3e7   : > { %v7155_v42 = vmul.f32 2.0, %v7154_v41 }
 0x3e9   : > { %v7157_v43 = vadd.f32 %v7156_v35, %v7155_v42 }
 0x3eb   : > { %v7163_v45 = vmul.f32 %v7162_v44, %v7157_v43 }
 0x3ed   : > { %v7168_v55 = vmul.f32 %v8799_v50, %v7163_v45 }
 0x3ef   : > { %v7170_v56 = vsel %vm7169_vm2, %v7168_v55, 0.0 }
 0x3f0   : > { %7171 = vadd.xlane.f32.xlu1 %v7170_v56 }
 0x47d   : > { %v7172_v63 = vpop.xlane.xlu1 %7171 }
 0x47e   : > { %v7173_v46 = vrot.slane %v7172_v63, 4 }
 0x480   : > { %v7174_v2 = vadd.f32 %v7173_v46, %v7172_v63 }
 0x482   : > { %v7175_v3 = vrot.slane %v7174_v2, 2 }
 0x484   : > { %v7176_v4 = vadd.f32 %v7175_v3, %v7174_v2 }
 0x486   : > { %v7177_v5 = vrot.slane %v7176_v4, 1 }
 0x488   : > { %v7178_v6 = vadd.f32 %v7177_v5, %v7176_v4 }
 0x48a   : > { %8652 = vpush %v7178_v6 }
 0x4bb   : > { %s8653_s23 = spop %8652 }
 0x4bc   : > { %v7187_v8 = vstv %s8653_s23 }
 0x4bd   : > { %v7188_v11 = vsel %vm7183_vm4, %v7187_v8, %v7186_v7 }
 0x4be   : > { %v7190_v12 = vsel %vm7182_vm5, %v7189_v10, %v7188_v11 }
 0x4bf   : > { %7191 = vst [vmem:[%s448_s15] sm:$0x1] %v7190_v12 }
 0x4c0   : > { %8946 = shalt.err (!%p8943_p10)
}
 0x4c1   : > { %s8947_s26 = scalar_lea.hbm %s9900_s30, 16  ;;  %s8951_s15 = scalar_lea.hbm %s10042_s24, 160 }
 0x4c2   : > { %p8948_p5 = scmp.ne.s32.totalorder %s9900_s30, %s8947_s26  ;;  %p8952_p3 = scmp.lt.u32.totalorder %s9900_s30, %s10042_s24 }
 0x4c3   : > { %p8953_p0 = scmp.lt.u32.totalorder %s8951_s15, %s8947_s26  ;;  %p8955_p6 = scmp.lt.u32.totalorder %s8947_s26, %s9900_s30 }
 0x4c4   : > { %p8949_p13 = pnand %p8948_p5, %p9298_p11 }
 0x4c5   : > { %p8954_p12 = por %p8953_p0, %p8952_p3 }
 0x4c6   : > { %p8950_p2 = pneg %p8949_p13 }
 0x4c7   : > { %p8956_p8 = por %p8955_p6, %p8954_p12 }
 0x4c9   : > { %p8957_p7 = pnand %p8956_p8, %p8950_p2 }
 0x4cb   : > { %8960 = shalt.err (!%p8957_p7)
}
 0x4cc   : > { %8671 = dma.vmem_to_hbm [thread:$0]  (%p9298_p11), %s9902_s22, 16, %s9900_s30, %s7193_s20  }
 0x4cd PF: > { %s10043_s0 = sld [smem:[#allocation19_spill]]  ;;  %s10044_s9 = sld [smem:[#allocation22_spill]] }
 0x4ce   : > { %p8701_p9 = scmp.ge.s32.totalorder %s9071_s19, 2 }
 0x4d3   : > { %s7219_s16 = sand.u32 1, %s10043_s0   ;;  %p10045_p1 = scmp.ne.s32.totalorder %s10044_s9, 0 }
 0x4d4   : > { %s7220_s6 = scalar_lea.sflag [#allocation4], %s7219_s16 }
 0x4d5   : > { %p8691_p4 = pnand %p8701_p9, %p10045_p1 }
 0x4d7   : > { %9026 = dma.done.wait (!%p8691_p4), %s7220_s6, 16  }
 0x4d8   : > { %9028 = vsyncadd (!%p8691_p4), %s7220_s6, 4294967280  ;;  %s30_s19 = sadd.s32 1, %s9071_s19   ;;  %s10046_s4 = sld [smem:[#allocation23_spill]] }
 0x4d9   : > { %p27_p10 = scmp.ge.s32.totalorder %s30_s19, 12   ;;  %s10047_s22 = sld [smem:[#allocation25_spill]] }
 0x4da   : > { %s10048_s30 = smov %s9035_s10  ;;  %s10049_s10 = smov %s9039_s11 }
 0x4db   : > { %s10050_s11 = smov %s9376_s12  ;;  %s10051_s12 = smov %s9047_s13 }
 0x4dc   : > { %s10052_s13 = smov %s9051_s14  ;;  %s10053_s14 = smov %s9321_s3 }
 0x4dd   : > { %s10054_s15 = smov %s9063_s17  ;;  %s10055_s16 = smov %s9067_s18 }
 0x4de   : > { %s10056_s17 = smov %s10046_s4  ;;  %29 = sbr.rel (!%p27_p10) target bundleno = 21 (0x15), region = 127 }
 0x4df   : > { %s10057_s18 = smov %s10047_s22 }
 0x4e5   :  { %7224 = vsyncpa [#allocation3], 1 }
 0x4e6   :  { %7226 = vsyncpa [#allocation3 + $0x1], 1 }
 0x4e7   :  { %7227 = vsyncpa [#allocation8], 1 }
 0x4e8   :  { %7229 = vsyncpa [#allocation8 + $0x1], 1 }
 0x4e9   :  { %7230 = vsyncpa [#allocation11], 1 }
 0x4ea   :  { %7231 = vsyncpa [#allocation4], 1 }
 0x4eb   :  { %7233 = vsyncpa [#allocation4 + $0x1], 1 }
 0x4ec   :  { %7234 = vsyncpa [#allocation5], 1 }
 0x4ed   :  { %7236 = vsyncpa [#allocation5 + $0x1], 1 }

</bundles_post_ra>
